<compile_context>
chip_gen: v7x
topology: tpu7x:2x2x1
jax: 0.10.0
libtpu: 0.0.40
codegen_flags: <defaults>
</compile_context>

<pallas_src>
import jax
import jax.numpy as jnp
from jax.experimental import pallas as pl
from jax.experimental.pallas import tpu as pltpu


# ----------------------------------------------------------------------------
# Kernel: one grid step = one branch (0 = actor, 1 = value) x one batch tile.
# ----------------------------------------------------------------------------
def actor_critic_kernel(
    x_ref,
    w1_ref, b1_ref, w2_ref, b2_ref, w3_ref, b3_ref, w4_ref, b4_ref,
    out_ref,
):
    x = x_ref[...]  # (tile_b, F) f32

    def linear(h_f32, w_ref, b_ref):
        # bf16 operands on the MXU, f32 accumulation, f32 bias add.
        return (
            jnp.dot(
                h_f32.astype(jnp.bfloat16),
                w_ref[...],
                preferred_element_type=jnp.float32,
            )
            + b_ref[...]
        )

    h = jnp.maximum(linear(x, w1_ref, b1_ref), 0.0)
    h = jnp.maximum(linear(h, w2_ref, b2_ref), 0.0)
    h = jnp.maximum(linear(h, w3_ref, b3_ref), 0.0)
    y = linear(h, w4_ref, b4_ref)                       # (tile_b, O) f32

    branch = pl.program_id(0)

    @pl.when(branch == 0)
    def _():
        # actor branch: numerically stable softmax over the actions axis.
        m = jnp.max(y, axis=1, keepdims=True)
        e = jnp.exp(y - m)
        denom = jnp.sum(e, axis=1, keepdims=True)
        out_ref[...] = (e * pl.reciprocal(denom, approx=True)).astype(out_ref.dtype)

    @pl.when(branch == 1)
    def _():
        # value branch: raw linear output (cols >= 1 are zero padding).
        out_ref[...] = y.astype(out_ref.dtype)


# ----------------------------------------------------------------------------
# Wrapper
# ----------------------------------------------------------------------------
def actor_critic_forward(state, packed, *, tile_b=None):
    """state: (B, F) float32.  packed: (W1,b1,W2,b2,W3,b3,W4,b4) stacked params."""
    W1, b1, W2, b2, W3, b3, W4, b4 = packed
    B, F = state.shape
    H = W1.shape[2]
    O = W4.shape[2]                       # n_actions (value head zero-padded)

    if tile_b is None:
        tile_b = B
    assert B % tile_b == 0
    assert tile_b == B or tile_b % 8 == 0

    grid = (2, B // tile_b)               # (branch, batch tile)

    in_specs = [
        # state: same batch tile for both branches
        pl.BlockSpec((tile_b, F), lambda br, i: (i, 0)),
        # per-branch parameter slabs (leading branch dim squeezed out)
        pl.BlockSpec((None, F, H), lambda br, i: (br, 0, 0)),
        pl.BlockSpec((None, 1, H), lambda br, i: (br, 0, 0)),
        pl.BlockSpec((None, H, H), lambda br, i: (br, 0, 0)),
        pl.BlockSpec((None, 1, H), lambda br, i: (br, 0, 0)),
        pl.BlockSpec((None, H, H), lambda br, i: (br, 0, 0)),
        pl.BlockSpec((None, 1, H), lambda br, i: (br, 0, 0)),
        pl.BlockSpec((None, H, O), lambda br, i: (br, 0, 0)),
        pl.BlockSpec((None, 1, O), lambda br, i: (br, 0, 0)),
    ]
    out_specs = pl.BlockSpec((None, tile_b, O), lambda br, i: (br, i, 0))

    out = pl.pallas_call(
        actor_critic_kernel,
        out_shape=jax.ShapeDtypeStruct((2, B, O), jnp.float32),
        grid_spec=pltpu.PrefetchScalarGridSpec(
            num_scalar_prefetch=0,
            grid=grid,
            in_specs=in_specs,
            out_specs=out_specs,
        ),
        compiler_params=pltpu.CompilerParams(
            # branch axis parallel -> both TensorCores on v7x; batch tiles parallel.
            dimension_semantics=("parallel", "parallel"),
        ),
    )(state, W1, b1, W2, b2, W3, b3, W4, b4)

    probs = out[0]            # (B, n_actions)
    value = out[1][:, :1]     # (B, 1)
    return probs, value


# ----------------------------------------------------------------------------
# Deterministic parameter construction (PyTorch nn.Linear-style init) + packing
# ----------------------------------------------------------------------------
def init_params(key, in_dim, hidden_dim, n_actions):
    def linear_init(k, fan_in, fan_out):
        kw, kb = jax.random.split(k)
        bound = 1.0 / jnp.sqrt(jnp.float32(fan_in))
        # Stored as (in, out) — the transpose of PyTorch's (out, in) weight.
        w = jax.random.uniform(kw, (fan_in, fan_out), jnp.float32, -bound, bound)
        b = jax.random.uniform(kb, (1, fan_out), jnp.float32, -bound, bound)
        return w, b

    keys = jax.random.split(key, 8)
    dims = [(in_dim, hidden_dim), (hidden_dim, hidden_dim),
            (hidden_dim, hidden_dim)]
    actor = [linear_init(keys[i], di, do) for i, (di, do) in enumerate(dims)]
    actor.append(linear_init(keys[3], hidden_dim, n_actions))
    value = [linear_init(keys[4 + i], di, do) for i, (di, do) in enumerate(dims)]
    value.append(linear_init(keys[7], hidden_dim, 1))
    return actor, value


def pack_params(actor, value, n_actions):
    """Stack actor/value layers along a leading branch axis; weights -> bf16.

    The value head (H,1)/(1,1) is zero-padded to (H,n_actions)/(1,n_actions)
    so both branches share one parameter layout; only column 0 of the value
    branch output is meaningful.
    """
    aw4, ab4 = actor[3]
    vw4, vb4 = value[3]
    vw4p = jnp.zeros_like(aw4).at[:, :1].set(vw4)
    vb4p = jnp.zeros_like(ab4).at[:, :1].set(vb4)
    actor = list(actor)
    value = list(value)
    value[3] = (vw4p, vb4p)

    packed = []
    for layer in range(4):
        w = jnp.stack([actor[layer][0], value[layer][0]], axis=0).astype(jnp.bfloat16)
        b = jnp.stack([actor[layer][1], value[layer][1]], axis=0)  # biases stay f32
        packed.extend([w, b])
    return tuple(packed)


# ----------------------------------------------------------------------------
# Pure-JAX reference (using the same bf16 weights) for sanity checking.
# ----------------------------------------------------------------------------
def reference_forward(state, packed):
    W1, b1, W2, b2, W3, b3, W4, b4 = packed

    def branch(bi):
        h = state
        for W, b in ((W1, b1), (W2, b2), (W3, b3)):
            h = jax.nn.relu(
                jnp.dot(h.astype(jnp.bfloat16), W[bi],
                        preferred_element_type=jnp.float32) + b[bi]
            )
        return (
            jnp.dot(h.astype(jnp.bfloat16), W4[bi],
                    preferred_element_type=jnp.float32) + b4[bi]
        )

    probs = jax.nn.softmax(branch(0), axis=1)
    value = branch(1)[:, :1]
    return probs, value


if __name__ == "__main__":
    # Module hyperparameters (consistent with the PyTorch ctor):
    #   input_dims = (8, 16) -> flattened feature size 128
    #   n_actions  = 4
    #   hidden_dim = 512 (fixed inside the module)
    input_dims = (8, 16)
    F_dim = input_dims[0] * input_dims[1]     # 128
    n_actions = 4
    hidden_dim = 512
    batch = 8

    key = jax.random.PRNGKey(0)
    k_state, k_params = jax.random.split(key)

    # state is the flattened observation: (B, input_dims[0]*input_dims[1])
    state = jax.random.normal(k_state, (batch, F_dim), dtype=jnp.float32)
    actor_p, value_p = init_params(k_params, F_dim, hidden_dim, n_actions)
    packed = pack_params(actor_p, value_p, n_actions)

    probs, value = actor_critic_forward(state, packed)
    probs = jax.block_until_ready(probs)
    value = jax.block_until_ready(value)

    # Sanity check against the pure-JAX reference (same bf16 weights).
    ref_probs, ref_value = reference_forward(state, packed)
    assert probs.shape == (batch, n_actions)
    assert value.shape == (batch, 1)
    # Tolerances account for the approx (EUP) reciprocal in the softmax and
    # bf16-weight matmul accumulation-order differences.
    assert jnp.allclose(probs, ref_probs, atol=2e-3, rtol=1e-2)
    assert jnp.allclose(value, ref_value, atol=5e-3, rtol=1e-2)
    assert jnp.allclose(jnp.sum(probs, axis=1), 1.0, atol=2e-3)

    print("KERNEL_OK")
</pallas_src>

<mosaic_0001>
module attributes {stable_mosaic.version = 11 : i64} {
  func.func @actor_critic_kernel(%arg0: i32, %arg1: i32, %arg2: memref<8x128xf32, #tpu.memory_space<vmem>>, %arg3: memref<1x128x512xbf16, #tpu.memory_space<vmem>>, %arg4: memref<1x1x512xf32, #tpu.memory_space<vmem>>, %arg5: memref<1x512x512xbf16, #tpu.memory_space<vmem>>, %arg6: memref<1x1x512xf32, #tpu.memory_space<vmem>>, %arg7: memref<1x512x512xbf16, #tpu.memory_space<vmem>>, %arg8: memref<1x1x512xf32, #tpu.memory_space<vmem>>, %arg9: memref<1x512x4xbf16, #tpu.memory_space<vmem>>, %arg10: memref<1x1x4xf32, #tpu.memory_space<vmem>>, %arg11: memref<1x8x4xf32, #tpu.memory_space<vmem>>) attributes {dimension_semantics = [#tpu.dimension_semantics<parallel>, #tpu.dimension_semantics<parallel>], iteration_bounds = array<i64: 2, 1>, scalar_prefetch = 0 : i64, scratch_operands = 0 : i64, tpu.core_type = #tpu.core_type<tc>, window_params = [{transform_indices = @transform_0, window_bounds = array<i64: 8, 128>}, {transform_indices = @transform_1, window_bounds = array<i64: 1, 128, 512>}, {transform_indices = @transform_2, window_bounds = array<i64: 1, 1, 512>}, {transform_indices = @transform_3, window_bounds = array<i64: 1, 512, 512>}, {transform_indices = @transform_4, window_bounds = array<i64: 1, 1, 512>}, {transform_indices = @transform_5, window_bounds = array<i64: 1, 512, 512>}, {transform_indices = @transform_6, window_bounds = array<i64: 1, 1, 512>}, {transform_indices = @transform_7, window_bounds = array<i64: 1, 512, 4>}, {transform_indices = @transform_8, window_bounds = array<i64: 1, 1, 4>}, {transform_indices = @transform_9, window_bounds = array<i64: 1, 8, 4>}]} {
    %c0 = arith.constant 0 : index
    %c0_0 = arith.constant 0 : index
    %0 = vector.load %arg2[%c0, %c0_0] : memref<8x128xf32, #tpu.memory_space<vmem>>, vector<8x128xf32>
    %1 = arith.truncf %0 : vector<8x128xf32> to vector<8x128xbf16>
    %c0_1 = arith.constant 0 : index
    %c0_2 = arith.constant 0 : index
    %c0_3 = arith.constant 0 : index
    %2 = vector.load %arg3[%c0_1, %c0_2, %c0_3] : memref<1x128x512xbf16, #tpu.memory_space<vmem>>, vector<1x128x512xbf16>
    %3 = vector.shape_cast %2 : vector<1x128x512xbf16> to vector<128x512xbf16>
    %cst = arith.constant dense<0.000000e+00> : vector<8x512xf32>
    %4 = tpu.matmul %1, %3, %cst {dimension_numbers = #tpu.dot_dimension_numbers<[1], [0], [0], [1], [0, 0, 1, 1], [], []>} : vector<8x128xbf16>, vector<128x512xbf16>, vector<8x512xf32> -> vector<8x512xf32>
    %c0_4 = arith.constant 0 : index
    %c0_5 = arith.constant 0 : index
    %c0_6 = arith.constant 0 : index
    %5 = vector.load %arg4[%c0_4, %c0_5, %c0_6] : memref<1x1x512xf32, #tpu.memory_space<vmem>>, vector<1x1x512xf32>
    %6 = vector.shape_cast %5 : vector<1x1x512xf32> to vector<1x512xf32>
    %7 = vector.broadcast %6 : vector<1x512xf32> to vector<8x512xf32>
    %8 = arith.addf %4, %7 : vector<8x512xf32>
    %cst_7 = arith.constant 0.000000e+00 : f32
    %9 = vector.broadcast %cst_7 : f32 to vector<8x512xf32>
    %10 = arith.maximumf %8, %9 : vector<8x512xf32>
    %11 = arith.truncf %10 : vector<8x512xf32> to vector<8x512xbf16>
    %c0_8 = arith.constant 0 : index
    %c0_9 = arith.constant 0 : index
    %c0_10 = arith.constant 0 : index
    %12 = vector.load %arg5[%c0_8, %c0_9, %c0_10] : memref<1x512x512xbf16, #tpu.memory_space<vmem>>, vector<1x512x512xbf16>
    %13 = vector.shape_cast %12 : vector<1x512x512xbf16> to vector<512x512xbf16>
    %cst_11 = arith.constant dense<0.000000e+00> : vector<8x512xf32>
    %14 = tpu.matmul %11, %13, %cst_11 {dimension_numbers = #tpu.dot_dimension_numbers<[1], [0], [0], [1], [0, 0, 1, 1], [], []>} : vector<8x512xbf16>, vector<512x512xbf16>, vector<8x512xf32> -> vector<8x512xf32>
    %c0_12 = arith.constant 0 : index
    %c0_13 = arith.constant 0 : index
    %c0_14 = arith.constant 0 : index
    %15 = vector.load %arg6[%c0_12, %c0_13, %c0_14] : memref<1x1x512xf32, #tpu.memory_space<vmem>>, vector<1x1x512xf32>
    %16 = vector.shape_cast %15 : vector<1x1x512xf32> to vector<1x512xf32>
    %17 = vector.broadcast %16 : vector<1x512xf32> to vector<8x512xf32>
    %18 = arith.addf %14, %17 : vector<8x512xf32>
    %cst_15 = arith.constant 0.000000e+00 : f32
    %19 = vector.broadcast %cst_15 : f32 to vector<8x512xf32>
    %20 = arith.maximumf %18, %19 : vector<8x512xf32>
    %21 = arith.truncf %20 : vector<8x512xf32> to vector<8x512xbf16>
    %c0_16 = arith.constant 0 : index
    %c0_17 = arith.constant 0 : index
    %c0_18 = arith.constant 0 : index
    %22 = vector.load %arg7[%c0_16, %c0_17, %c0_18] : memref<1x512x512xbf16, #tpu.memory_space<vmem>>, vector<1x512x512xbf16>
    %23 = vector.shape_cast %22 : vector<1x512x512xbf16> to vector<512x512xbf16>
    %cst_19 = arith.constant dense<0.000000e+00> : vector<8x512xf32>
    %24 = tpu.matmul %21, %23, %cst_19 {dimension_numbers = #tpu.dot_dimension_numbers<[1], [0], [0], [1], [0, 0, 1, 1], [], []>} : vector<8x512xbf16>, vector<512x512xbf16>, vector<8x512xf32> -> vector<8x512xf32>
    %c0_20 = arith.constant 0 : index
    %c0_21 = arith.constant 0 : index
    %c0_22 = arith.constant 0 : index
    %25 = vector.load %arg8[%c0_20, %c0_21, %c0_22] : memref<1x1x512xf32, #tpu.memory_space<vmem>>, vector<1x1x512xf32>
    %26 = vector.shape_cast %25 : vector<1x1x512xf32> to vector<1x512xf32>
    %27 = vector.broadcast %26 : vector<1x512xf32> to vector<8x512xf32>
    %28 = arith.addf %24, %27 : vector<8x512xf32>
    %cst_23 = arith.constant 0.000000e+00 : f32
    %29 = vector.broadcast %cst_23 : f32 to vector<8x512xf32>
    %30 = arith.maximumf %28, %29 : vector<8x512xf32>
    %31 = arith.truncf %30 : vector<8x512xf32> to vector<8x512xbf16>
    %c0_24 = arith.constant 0 : index
    %c0_25 = arith.constant 0 : index
    %c0_26 = arith.constant 0 : index
    %32 = vector.load %arg9[%c0_24, %c0_25, %c0_26] : memref<1x512x4xbf16, #tpu.memory_space<vmem>>, vector<1x512x4xbf16>
    %33 = vector.shape_cast %32 : vector<1x512x4xbf16> to vector<512x4xbf16>
    %cst_27 = arith.constant dense<0.000000e+00> : vector<8x4xf32>
    %34 = tpu.matmul %31, %33, %cst_27 {dimension_numbers = #tpu.dot_dimension_numbers<[1], [0], [0], [1], [0, 0, 1, 1], [], []>} : vector<8x512xbf16>, vector<512x4xbf16>, vector<8x4xf32> -> vector<8x4xf32>
    %c0_28 = arith.constant 0 : index
    %c0_29 = arith.constant 0 : index
    %c0_30 = arith.constant 0 : index
    %35 = vector.load %arg10[%c0_28, %c0_29, %c0_30] : memref<1x1x4xf32, #tpu.memory_space<vmem>>, vector<1x1x4xf32>
    %36 = vector.shape_cast %35 : vector<1x1x4xf32> to vector<1x4xf32>
    %37 = vector.broadcast %36 : vector<1x4xf32> to vector<8x4xf32>
    %38 = arith.addf %34, %37 : vector<8x4xf32>
    %c0_i32 = arith.constant 0 : i32
    %39 = arith.cmpi eq, %arg0, %c0_i32 : i32
    %40 = arith.extui %39 : i1 to i32
    %c0_i32_31 = arith.constant 0 : i32
    %41 = arith.cmpi ne, %40, %c0_i32_31 : i32
    scf.if %41 {
      %cst_33 = arith.constant dense<0xFF800000> : vector<8xf32>
      %45 = vector.multi_reduction <maximumf>, %38, %cst_33 [1] : vector<8x4xf32> to vector<8xf32>
      %46 = vector.shape_cast %45 : vector<8xf32> to vector<8x1xf32>
      %47 = vector.broadcast %46 : vector<8x1xf32> to vector<8x4xf32>
      %48 = arith.subf %38, %47 : vector<8x4xf32>
      %49 = math.exp %48 : vector<8x4xf32>
      %cst_34 = arith.constant dense<0.000000e+00> : vector<8xf32>
      %50 = vector.multi_reduction <add>, %49, %cst_34 [1] : vector<8x4xf32> to vector<8xf32>
      %51 = vector.shape_cast %50 : vector<8xf32> to vector<8x1xf32>
      %52 = tpu.reciprocal %51 {approx = true} : vector<8x1xf32> -> vector<8x1xf32>
      %53 = vector.broadcast %52 : vector<8x1xf32> to vector<8x4xf32>
      %54 = arith.mulf %49, %53 : vector<8x4xf32>
      %c0_35 = arith.constant 0 : index
      %c0_36 = arith.constant 0 : index
      %c0_37 = arith.constant 0 : index
      %55 = vector.load %arg11[%c0_35, %c0_36, %c0_37] : memref<1x8x4xf32, #tpu.memory_space<vmem>>, vector<1x8x4xf32>
      %56 = vector.shape_cast %55 : vector<1x8x4xf32> to vector<8x4xf32>
      %57 = vector.shape_cast %54 : vector<8x4xf32> to vector<1x8x4xf32>
      tpu.vector_store %arg11[%c0_35, %c0_36, %c0_37], %57 {strides = array<i32>} : memref<1x8x4xf32, #tpu.memory_space<vmem>>, vector<1x8x4xf32>,
    } else {
    }
    %c1_i32 = arith.constant 1 : i32
    %42 = arith.cmpi eq, %arg0, %c1_i32 : i32
    %43 = arith.extui %42 : i1 to i32
    %c0_i32_32 = arith.constant 0 : i32
    %44 = arith.cmpi ne, %43, %c0_i32_32 : i32
    scf.if %44 {
      %c0_33 = arith.constant 0 : index
      %c0_34 = arith.constant 0 : index
      %c0_35 = arith.constant 0 : index
      %45 = vector.load %arg11[%c0_33, %c0_34, %c0_35] : memref<1x8x4xf32, #tpu.memory_space<vmem>>, vector<1x8x4xf32>
      %46 = vector.shape_cast %45 : vector<1x8x4xf32> to vector<8x4xf32>
      %47 = vector.shape_cast %38 : vector<8x4xf32> to vector<1x8x4xf32>
      tpu.vector_store %arg11[%c0_33, %c0_34, %c0_35], %47 {strides = array<i32>} : memref<1x8x4xf32, #tpu.memory_space<vmem>>, vector<1x8x4xf32>,
    } else {
    }
    return
  }
  func.func @transform_0(%arg0: i32, %arg1: i32) -> (i32, i32) {
    %c0_i32 = arith.constant 0 : i32
    %c0_i32_0 = arith.constant 0 : i32
    return %arg1, %c0_i32 : i32, i32
  }
  func.func @transform_1(%arg0: i32, %arg1: i32) -> (i32, i32, i32) {
    %c0_i32 = arith.constant 0 : i32
    %c0_i32_0 = arith.constant 0 : i32
    %c0_i32_1 = arith.constant 0 : i32
    return %arg0, %c0_i32, %c0_i32_0 : i32, i32, i32
  }
  func.func @transform_2(%arg0: i32, %arg1: i32) -> (i32, i32, i32) {
    %c0_i32 = arith.constant 0 : i32
    %c0_i32_0 = arith.constant 0 : i32
    %c0_i32_1 = arith.constant 0 : i32
    return %arg0, %c0_i32, %c0_i32_0 : i32, i32, i32
  }
  func.func @transform_3(%arg0: i32, %arg1: i32) -> (i32, i32, i32) {
    %c0_i32 = arith.constant 0 : i32
    %c0_i32_0 = arith.constant 0 : i32
    %c0_i32_1 = arith.constant 0 : i32
    return %arg0, %c0_i32, %c0_i32_0 : i32, i32, i32
  }
  func.func @transform_4(%arg0: i32, %arg1: i32) -> (i32, i32, i32) {
    %c0_i32 = arith.constant 0 : i32
    %c0_i32_0 = arith.constant 0 : i32
    %c0_i32_1 = arith.constant 0 : i32
    return %arg0, %c0_i32, %c0_i32_0 : i32, i32, i32
  }
  func.func @transform_5(%arg0: i32, %arg1: i32) -> (i32, i32, i32) {
    %c0_i32 = arith.constant 0 : i32
    %c0_i32_0 = arith.constant 0 : i32
    %c0_i32_1 = arith.constant 0 : i32
    return %arg0, %c0_i32, %c0_i32_0 : i32, i32, i32
  }
  func.func @transform_6(%arg0: i32, %arg1: i32) -> (i32, i32, i32) {
    %c0_i32 = arith.constant 0 : i32
    %c0_i32_0 = arith.constant 0 : i32
    %c0_i32_1 = arith.constant 0 : i32
    return %arg0, %c0_i32, %c0_i32_0 : i32, i32, i32
  }
  func.func @transform_7(%arg0: i32, %arg1: i32) -> (i32, i32, i32) {
    %c0_i32 = arith.constant 0 : i32
    %c0_i32_0 = arith.constant 0 : i32
    %c0_i32_1 = arith.constant 0 : i32
    return %arg0, %c0_i32, %c0_i32_0 : i32, i32, i32
  }
  func.func @transform_8(%arg0: i32, %arg1: i32) -> (i32, i32, i32) {
    %c0_i32 = arith.constant 0 : i32
    %c0_i32_0 = arith.constant 0 : i32
    %c0_i32_1 = arith.constant 0 : i32
    return %arg0, %c0_i32, %c0_i32_0 : i32, i32, i32
  }
  func.func @transform_9(%arg0: i32, %arg1: i32) -> (i32, i32, i32) {
    %c0_i32 = arith.constant 0 : i32
    %c0_i32_0 = arith.constant 0 : i32
    return %arg0, %arg1, %c0_i32 : i32, i32, i32
  }
}

</mosaic_0001>

<bundles_post_ra>
// kernel: tpu_custom_call.1
= control target key start
LH: loop header
LB: loop body
LE: loop exit
PB: predicated region body
PF: predicated region fallthrough
CT: control target
= control target key end

     0   :  { %s5134_s0 = inlined_call_operand.vmem [shape: f32[8,128], index: 0, kind: input, shape index: {}]   ;;  %s5135_s1 = inlined_call_operand.vmem [shape: bf16[2,128,512], index: 1, kind: input, shape index: {}]   ;;  %s5136_s2 = inlined_call_operand.vmem [shape: f32[2,1,512], index: 2, kind: input, shape index: {}]   ;;  %s5137_s3 = inlined_call_operand.hbm [shape: bf16[2,512,512], index: 3, kind: input, shape index: {}]   ;;  %s5138_s4 = inlined_call_operand.vmem [shape: f32[2,1,512], index: 4, kind: input, shape index: {}]   ;;  %s5139_s5 = inlined_call_operand.hbm [shape: bf16[2,512,512], index: 5, kind: input, shape index: {}]   ;;  %s5140_s6 = inlined_call_operand.hbm [shape: f32[2,1,512], index: 6, kind: input, shape index: {}]   ;;  %s5141_s7 = inlined_call_operand.vmem [shape: bf16[2,512,4], index: 7, kind: input, shape index: {}]   ;;  %s5142_s8 = inlined_call_operand.vmem [shape: f32[2,1,4], index: 8, kind: input, shape index: {}]   ;;  %s5143_s9 = inlined_call_operand.vmem [shape: f32[2,8,4], index: 9, kind: output, shape index: {}]  }
   0x1   :  { %5153 = sst [smem:[#allocation12_spill]] %s5137_s3 }
   0x2   :  { %5154 = sst [smem:[#allocation13_spill]] %s5139_s5 }
   0x3   :  { %14 = vsyncpa [#allocation3], 0 }
   0x4   :  { %16 = vsyncpa [#allocation3 + $0x1], 0 }
   0x5   :  { %17 = vsyncpa [#allocation5], 0 }
   0x6   :  { %19 = vsyncpa [#allocation5 + $0x1], 0  ;;  %s4507_s30 = smov 0   ;;  %s4509_s10 = smov 0  }
   0x7   :  { %s4511_s11 = smov 0   ;;  %s4513_s12 = smov 0  }
   0x8   :  { %s4515_s13 = smov 0   ;;  %s4517_s14 = smov 0  }
   0x9 LB: > { %5155 = sst [smem:[#allocation9_spill]] %s4437_s11  ;;  %s5144_s15 = sadd.s32 4294967295, %s4449_s14   ;;  %s4449_s14 = sphi %s4517_s14, %s25_s14   ;;  %s4445_s13 = sphi %s4515_s13, %s5180_s13   ;;  %s4441_s12 = sphi %s4513_s12, %s5179_s12   ;;  %s4437_s11 = sphi %s4511_s11, %s5178_s11   ;;  %s4433_s10 = sphi %s4509_s10, %s5177_s10   ;;  %s4429_s30 = sphi %s4507_s30, %s5176_s30  }
   0xa   : > { %s37_s16 = sadd.s32 1, %s4445_s13  ;;  %s122_s17 = sadd.s32 1, %s4437_s11 }
   0xb   : > { %p39_p0 = scmp.ge.s32.totalorder %s37_s16, 2  ;;  %p129_p1 = scmp.ne.s32.totalorder %s4437_s11, %s4433_s10 }
   0xc   : > { %p130_p2 = scmp.eq.s32.totalorder %s4449_s14, 0  ;;  %p135_p4 = scmp.ne.s32.totalorder %s4433_s10, %s4429_s30 }
   0xd   : > { %s5182_s16 = smov (%p39_p0, %s37_s16), 0  ;;  %p136_p5 = scmp.eq.s32.totalorder %s5144_s15, 0 }
   0xe   : > { %5156 = sst [smem:[#allocation10_spill]] %s5182_s16  ;;  %p131_p3 = por %p130_p2, %p129_p1 }
   0xf   : > { %s119_s18 = ssub.s32 %s4445_s13, %s5182_s16  ;;  %p4548_p7 = por %p136_p5, %p135_p4 }
  0x10   : > { %p120_p6 = scmp.eq.s32.totalorder %s119_s18, 0  ;;  %p3785_p8 = scmp.lt.s32.totalorder %s4449_s14, 2 }
  0x11   : > { %s5157_s19 = scalar_select %p4548_p7, 1, 0 }
  0x12   : > { %s4554_s20 = scalar_select %p120_p6, %s4437_s11, %s122_s17  }
  0x13   : > { %s4557_s21 = sand.u32 1, %s4437_s11   ;;  %s5146_s22 = sshll.u32 %s4445_s13, 14 }
  0x14   : > { %5158 = sst [smem:[#allocation11_spill]] %s4554_s20  ;;  %s5145_s23 = sshll.u32 %s4557_s21, 10 }
  0x15   : > { %p4561_p9 = pnand %p3785_p8, %p131_p3  ;;  %s367_s25 = sand.u32 1, %s4449_s14  }
  0x16   : > { %s5160_s5 = sld [smem:[#allocation13_spill]]  ;;  %s371_s29 = scalar_lea.vmem [#allocation4], %s5145_s23 }
  0x17   : > { %s5159_s24 = scalar_select %p4561_p9, 1, 0 }
  0x18   : > { %s378_s30 = sshll.u32 %s371_s29, 4  ;;  %s4578_s17 = scalar_lea.sflag [#allocation5], %s367_s25  ;;  %s4575_s30 = int_to_ptr.vmem [resolvable:$true] %s378_s30 }
  0x19   : > { %p4584_p12 = pneg %p4561_p9 }
  0x1c   : > { %s4571_s28 = scalar_lea.hbm %s5160_s5, %s5146_s22  ;;  %s4310_s29 = scalar_lea.hbm %s5160_s5, 32768 }
  0x1d   : > { %s4305_s18 = scalar_lea.hbm %s4571_s28, 16384  ;;  %p4311_p1 = scmp.lt.u32.totalorder %s4571_s28, %s5160_s5 }
  0x1e   : > { %p4306_p11 = scmp.ne.s32.totalorder %s4571_s28, %s4305_s18  ;;  %p4312_p2 = scmp.lt.u32.totalorder %s4310_s29, %s4305_s18 }
  0x1f   : > { %p4314_p4 = scmp.lt.u32.totalorder %s4305_s18, %s4571_s28 }
  0x20   : > { %p4308_p13 = pnand %p4584_p12, %p4306_p11  ;;  %p4313_p3 = por %p4312_p2, %p4311_p1 }
  0x22   : > { %p4309_p0 = pneg %p4308_p13  ;;  %p4315_p5 = por %p4314_p4, %p4313_p3 }
  0x24   : > { %p4316_p6 = pnand %p4315_p5, %p4309_p0 }
  0x26   : > { %4319 = shalt.err (!%p4316_p6)
}
  0x27   : > { %s4320_s25 = scalar_lea.vmem %s4575_s30, 16384  ;;  %s4451_s26 = smov [#allocation4]  }
  0x28   : > { %p4321_p8 = scmp.ne.s32.totalorder %s4575_s30, %s4320_s25  ;;  %s4325_s27 = sshll.u32 %s4451_s26, 4  ;;  %s4326_s27 = int_to_ptr.vmem [resolvable:$false] %s4325_s27 }
  0x29   : > { %s4327_s22 = scalar_lea.vmem %s4326_s27, 32768  ;;  %p4328_p10 = scmp.lt.s32.totalorder %s4575_s30, %s4326_s27 }
  0x2a   : > { %p4323_p11 = pnand %p4321_p8, %p4584_p12  ;;  %p4329_p7 = scmp.lt.s32.totalorder %s4327_s22, %s4320_s25 }
  0x2c   : > { %p4324_p13 = pneg %p4323_p11  ;;  %p4330_p1 = por %p4329_p7, %p4328_p10 }
  0x2e   : > { %p4331_p2 = pnand %p4330_p1, %p4324_p13 }
  0x30   : > { %4334 = shalt.err (!%p4331_p2)
}
  0x31   : > { %s5149_s23 = smov 256   ;;  %s5150_s18 = smov 16  }
  0x32   : > { %3781 = dma.hbm_to_vmem [thread:$0]  (!%p4561_p9), %s4571_s28, 16384, %s4575_s30, %s4578_s17, %s5149_s23, %s5149_s23, %s5150_s18  }
  0x33   : > { %p419_p7 = scmp.lt.s32.totalorder %s4449_s14, 3  ;;  %p5162_p10 = scmp.ge.s32.totalorder %s4449_s14, 1 }
  0x34   : > { %s5164_s25 = sshll.u32 %s4445_s13, 14  ;;  %s5165_s3 = sld [smem:[#allocation12_spill]] }
  0x35   : > { %p4614_p0 = pnand %p5162_p10, %p419_p7  ;;  %s5166_s5 = sshll.u32 %s4557_s21, 10 }
  0x36   : > { %s343_s16 = scalar_lea.vmem [#allocation2], %s5166_s5  ;;  %s3357_s28 = sshll.u32 %s4557_s21, 2 }
  0x37   : > { %s5163_s29 = scalar_select %p4614_p0, 1, 0 }
  0x38   : > { %s350_s20 = sshll.u32 %s343_s16, 4  ;;  %s340_s30 = scalar_lea.sflag [#allocation3], %s4557_s21  ;;  %s4627_s20 = int_to_ptr.vmem [resolvable:$true] %s350_s20 }
  0x3a   : > { %s4623_s22 = scalar_lea.hbm %s5165_s3, %s5164_s25  ;;  %s4340_s25 = scalar_lea.hbm %s5165_s3, 32768 }
  0x3b   : > { %s4335_s23 = scalar_lea.hbm %s4623_s22, 16384  ;;  %p4341_p6 = scmp.lt.u32.totalorder %s4623_s22, %s5165_s3 }
  0x3c   : > { %p4336_p3 = scmp.ne.s32.totalorder %s4623_s22, %s4335_s23  ;;  %p4342_p8 = scmp.lt.u32.totalorder %s4340_s25, %s4335_s23 }
  0x3d   : > { %p4344_p13 = scmp.lt.u32.totalorder %s4335_s23, %s4623_s22 }
  0x3e   : > { %p4338_p4 = pnand %p4336_p3, %p4584_p12  ;;  %p4343_p11 = por %p4342_p8, %p4341_p6 }
  0x40   : > { %p4339_p5 = pneg %p4338_p4  ;;  %p4345_p1 = por %p4344_p13, %p4343_p11 }
  0x42   : > { %p4346_p2 = pnand %p4345_p1, %p4339_p5 }
  0x44   : > { %4349 = shalt.err (!%p4346_p2)
}
  0x45   : > { %s4350_s5 = scalar_lea.vmem %s4627_s20, 16384  ;;  %s4454_s16 = smov [#allocation2]  }
  0x46   : > { %p4351_p7 = scmp.ne.s32.totalorder %s4627_s20, %s4350_s5  ;;  %s4355_s18 = sshll.u32 %s4454_s16, 4  ;;  %s4356_s18 = int_to_ptr.vmem [resolvable:$false] %s4355_s18 }
  0x47   : > { %s4357_s11 = scalar_lea.vmem %s4356_s18, 32768  ;;  %p4358_p4 = scmp.lt.s32.totalorder %s4627_s20, %s4356_s18 }
  0x48   : > { %p4353_p10 = pnand %p4351_p7, %p4584_p12  ;;  %p4359_p0 = scmp.lt.s32.totalorder %s4357_s11, %s4350_s5 }
  0x4a   : > { %p4354_p3 = pneg %p4353_p10  ;;  %p4360_p6 = por %p4359_p0, %p4358_p4 }
  0x4c   : > { %p4361_p8 = pnand %p4360_p6, %p4354_p3 }
  0x4e   : > { %4364 = shalt.err (!%p4361_p8)
}
  0x4f   : > { %s5167_s23 = smov 16   ;;  %s5168_s26 = smov 256  }
  0x50   : > { %3778 = dma.hbm_to_vmem [thread:$0]  (!%p4561_p9), %s4623_s22, 16384, %s4627_s20, %s340_s30, %s5168_s26, %s5168_s26, %s5167_s23  }
  0x51   : > { %s3698_s25 = sshll.u32 %s4445_s13, 6  ;;  %s392_s18 = scalar_lea.vmem [#allocation6], %s3357_s28 }
  0x52   : > { %s4661_s5 = scalar_lea.hbm %s5140_s6, %s3698_s25  ;;  %s400_s11 = sshll.u32 %s392_s18, 4  ;;  %s401_s11 = int_to_ptr.vmem [resolvable:$true] %s400_s11 }
  0x53   : > { %s4365_s3 = scalar_lea.hbm %s4661_s5, 64  ;;  %s4370_s30 = scalar_lea.hbm %s5140_s6, 128 }
  0x54   : > { %p4366_p0 = scmp.ne.s32.totalorder %s4661_s5, %s4365_s3  ;;  %p4371_p13 = scmp.lt.u32.totalorder %s4661_s5, %s5140_s6 }
  0x55   : > { %p4372_p1 = scmp.lt.u32.totalorder %s4370_s30, %s4365_s3  ;;  %p4374_p7 = scmp.lt.u32.totalorder %s4365_s3, %s4661_s5 }
  0x56   : > { %p4368_p5 = pnand %p4366_p0, %p4584_p12 }
  0x57   : > { %p4373_p2 = por %p4372_p1, %p4371_p13 }
  0x58   : > { %p4369_p11 = pneg %p4368_p5 }
  0x59   : > { %p4375_p10 = por %p4374_p7, %p4373_p2 }
  0x5b   : > { %p4376_p3 = pnand %p4375_p10, %p4369_p11 }
  0x5d   : > { %4379 = shalt.err (!%p4376_p3)
}
  0x5e   : > { %s4380_s21 = scalar_lea.vmem %s401_s11, 64  ;;  %s4455_s28 = smov [#allocation6]  }
  0x5f   : > { %p4381_p4 = scmp.ne.s32.totalorder %s401_s11, %s4380_s21  ;;  %s4385_s25 = sshll.u32 %s4455_s28, 4  ;;  %s4386_s25 = int_to_ptr.vmem [resolvable:$false] %s4385_s25 }
  0x60   : > { %s4387_s27 = scalar_lea.vmem %s4386_s25, 128  ;;  %p4388_p0 = scmp.lt.s32.totalorder %s401_s11, %s4386_s25 }
  0x61   : > { %p4383_p6 = pnand %p4381_p4, %p4584_p12  ;;  %p4389_p5 = scmp.lt.s32.totalorder %s4387_s27, %s4380_s21 }
  0x63   : > { %p4384_p8 = pneg %p4383_p6  ;;  %p4390_p9 = por %p4389_p5, %p4388_p0 }
  0x65   : > { %p4391_p1 = pnand %p4390_p9, %p4384_p8 }
  0x67   : > { %4394 = shalt.err (!%p4391_p1)
}
  0x68   : > { %p5169_p13 = scmp.ne.s32.totalorder %s5159_s24, 0  ;;  %p5170_p11 = scmp.ne.s32.totalorder %s5163_s29, 0 }
  0x69   : > { %s4686_s3 = sand.u32 (!%p5170_p11), 1, %s4433_s10   ;;  %p5171_p9 = scmp.ne.s32.totalorder (!%p5170_p11), %s5157_s19, 0 }
  0x6a   : > { %3784 = dma.hbm_to_vmem [thread:$0]  (!%p5169_p13), %s4661_s5, 64, %s401_s11, %s4578_s17  }
  0x6b   : > { %423 = sbr.rel (%p5170_p11) target bundleno = 1489 (0x5d1), region = 56  ;;  %s3361_s15 = sshll.u32 (!%p5170_p11), %s4686_s3, 10 }
  0x6c   : > { %s426_s16 = scalar_lea.sflag (!%p5170_p11), [#allocation3], %s4686_s3  ;;  %s4690_s18 = scalar_lea.vmem (!%p5170_p11), [#allocation2], %s3361_s15 }
  0x72   : > { %4420 = dma.done.wait (%p5171_p9), %s426_s16, 16384  }
  0x73   : > { %4422 = vsyncadd (%p5171_p9), %s426_s16, 4294950912  ;;  %s5172_s24 = sadd.s32 4294967295, %s4449_s14   ;;  %s4698_s5 = scalar_lea.vmem [#allocation4], %s3361_s15 }
  0x74   : > { %s434_s17 = sand.u32 1, %s5172_s24  }
  0x75   : > { %s435_s29 = scalar_lea.sflag [#allocation5], %s434_s17 }
  0x76   : > { %4424 = dma.done.wait (%p5171_p9), %s435_s29, 16448  }
  0x77   : > { %4426 = vsyncadd (%p5171_p9), %s435_s29, 4294950848  ;;  %p523_p12 = scmp.lt.s32.totalorder %s4441_s12, 1  ;;  %v4456_v0 = vmov 0   ;;  %v552_v26 = vld [vmem:[%s5134_s0] sm:$0xff]  ;;  %v3890_v40 = vld [vmem:[%s4690_s18 + $0xc] ss:$16 sps:$4 sm:$0xff]  }
  0x78   : > { %800 = vmatprep.mubr.bf16.mxu0 %v4456_v0  ;;  %841 = vmatprep.mubr.bf16.mxu1 %v4456_v0  ;;  %v3887_v29 = vld [vmem:[%s4690_s18 + $0x4] ss:$16 sps:$4 sm:$0xff]   ;;  %v553_v30 = vpack.c.bf16 %v552_v26, %v552_v26  ;;  %v3885_v33 = vld [vmem:[%s4690_s18] ss:$16 sps:$4 sm:$0xff]   ;;  %v3888_v43 = vld [vmem:[%s4690_s18 + $0x8] ss:$16 sps:$4 sm:$0xff]  }
  0x79   : > { %s4706_s11 = scalar_select %p523_p12, %s4441_s12, 1  ;;  %v3893_v34 = vld [vmem:[%s4690_s18 + $0x24] ss:$16 sps:$4 sm:$0xff]   ;;  %v3891_v37 = vld [vmem:[%s4690_s18 + $0x20] ss:$16 sps:$4 sm:$0xff]  }
  0x7a   : > { %v3899_v38 = vld [vmem:[%s4690_s18 + $0x44] ss:$16 sps:$4 sm:$0xff]   ;;  %v3897_v41 = vld [vmem:[%s4690_s18 + $0x40] ss:$16 sps:$4 sm:$0xff]   ;;  %v3896_v44 = vld [vmem:[%s4690_s18 + $0x2c] ss:$16 sps:$4 sm:$0xff]  }
  0x7b   : > { %s3699_s20 = sshll.u32 %s4706_s11, 8  ;;  %s3370_s22 = sshll.u32 %s4706_s11, 3  ;;  %v3905_v42 = vld [vmem:[%s4690_s18 + $0x64] ss:$16 sps:$4 sm:$0xff]   ;;  %v3903_v45 = vld [vmem:[%s4690_s18 + $0x60] ss:$16 sps:$4 sm:$0xff]  }
  0x7c   : > { %s4715_s26 = scalar_lea.vmem %s5135_s1, %s3699_s20  ;;  %s4720_s28 = scalar_lea.vmem %s5143_s9, %s3370_s22  ;;  %v3911_v46 = vld [vmem:[%s4690_s18 + $0x84] ss:$16 sps:$4 sm:$0xff]   ;;  %v3894_v47 = vld [vmem:[%s4690_s18 + $0x28] ss:$16 sps:$4 sm:$0xff]   ;;  %v3902_v48 = vld [vmem:[%s4690_s18 + $0x4c] ss:$16 sps:$4 sm:$0xff]  }
  0x7d   : > { %v3837_v1 = vld [vmem:[%s4715_s26 + $0x4] ss:$16 sps:$4 sm:$0xff]   ;;  %v3839_v2 = vld [vmem:[%s4715_s26] ss:$16 sps:$4 sm:$0xff]   ;;  %v3861_v10 = vld [vmem:[%s4715_s26 + $0xc] ss:$16 sps:$4 sm:$0xff]   ;;  %s4828_s24 = scalar_lea.vmem %s5141_s7, %s3699_s20  ;;  %s543_s21 = scalar_lea.vmem %s5142_s8, %s4706_s11 }
  0x7e   : > { %768 = vmatprep.subr.bf16.mxu0 %v3837_v1  ;;  %v3840_v3 = vld [vmem:[%s4715_s26 + $0x24] ss:$16 sps:$4 sm:$0xff]   ;;  %v3842_v4 = vld [vmem:[%s4715_s26 + $0x20] ss:$16 sps:$4 sm:$0xff]   ;;  %v3863_v11 = vld [vmem:[%s4715_s26 + $0x8] ss:$16 sps:$4 sm:$0xff]   ;;  %809 = vmatprep.subr.bf16.mxu1 %v3861_v10 }
  0x7f   : > { %769 = vmatpush1.bf16.msra.mxu0 %v3839_v2  ;;  %v3843_v5 = vld [vmem:[%s4715_s26 + $0x44] ss:$16 sps:$4 sm:$0xff]   ;;  %v3845_v6 = vld [vmem:[%s4715_s26 + $0x40] ss:$16 sps:$4 sm:$0xff]   ;;  %v3864_v12 = vld [vmem:[%s4715_s26 + $0x2c] ss:$16 sps:$4 sm:$0xff]   ;;  %810 = vmatpush1.bf16.msra.mxu1 %v3863_v11 }
  0x80   : > { %770 = vmatprep.subr.bf16.mxu0 %v3840_v3  ;;  %v3846_v7 = vld [vmem:[%s4715_s26 + $0x64] ss:$16 sps:$4 sm:$0xff]   ;;  %v3848_v8 = vld [vmem:[%s4715_s26 + $0x60] ss:$16 sps:$4 sm:$0xff]   ;;  %v3866_v14 = vld [vmem:[%s4715_s26 + $0x28] ss:$16 sps:$4 sm:$0xff]   ;;  %811 = vmatprep.subr.bf16.mxu1 %v3864_v12 }
  0x81   : > { %v3849_v9 = vld [vmem:[%s4715_s26 + $0x84] ss:$16 sps:$4 sm:$0xff]   ;;  %v3851_v13 = vld [vmem:[%s4715_s26 + $0x80] ss:$16 sps:$4 sm:$0xff]   ;;  %v3867_v15 = vld [vmem:[%s4715_s26 + $0x4c] ss:$16 sps:$4 sm:$0xff]  }
  0x82   : > { %v3852_v16 = vld [vmem:[%s4715_s26 + $0xa4] ss:$16 sps:$4 sm:$0xff]   ;;  %v3854_v17 = vld [vmem:[%s4715_s26 + $0xa0] ss:$16 sps:$4 sm:$0xff]   ;;  %v3869_v18 = vld [vmem:[%s4715_s26 + $0x48] ss:$16 sps:$4 sm:$0xff]  }
  0x83   : > { %771 = vmatpush1.bf16.msra.mxu0 %v3842_v4  ;;  %812 = vmatpush1.bf16.msra.mxu1 %v3866_v14  ;;  %v3870_v19 = vld [vmem:[%s4715_s26 + $0x6c] ss:$16 sps:$4 sm:$0xff]   ;;  %v3855_v20 = vld [vmem:[%s4715_s26 + $0xc4] ss:$16 sps:$4 sm:$0xff]   ;;  %v3857_v21 = vld [vmem:[%s4715_s26 + $0xc0] ss:$16 sps:$4 sm:$0xff]  }
  0x84   : > { %772 = vmatprep.subr.bf16.mxu0 %v3843_v5  ;;  %813 = vmatprep.subr.bf16.mxu1 %v3867_v15  ;;  %v3872_v22 = vld [vmem:[%s4715_s26 + $0x68] ss:$16 sps:$4 sm:$0xff]   ;;  %v3873_v23 = vld [vmem:[%s4715_s26 + $0x8c] ss:$16 sps:$4 sm:$0xff]   ;;  %v3858_v24 = vld [vmem:[%s4715_s26 + $0xe4] ss:$16 sps:$4 sm:$0xff]  }
  0x85   : > { %v3860_v25 = vld [vmem:[%s4715_s26 + $0xe0] ss:$16 sps:$4 sm:$0xff]   ;;  %v3875_v27 = vld [vmem:[%s4715_s26 + $0x88] ss:$16 sps:$4 sm:$0xff]   ;;  %v3876_v28 = vld [vmem:[%s4715_s26 + $0xac] ss:$16 sps:$4 sm:$0xff]  }
  0x86   : > { %v3878_v31 = vld [vmem:[%s4715_s26 + $0xa8] ss:$16 sps:$4 sm:$0xff]   ;;  %v3879_v32 = vld [vmem:[%s4715_s26 + $0xcc] ss:$16 sps:$4 sm:$0xff]   ;;  %v3909_v49 = vld [vmem:[%s4690_s18 + $0x80] ss:$16 sps:$4 sm:$0xff]  }
  0x87   : > { %773 = vmatpush1.bf16.msra.mxu0 %v3845_v6  ;;  %814 = vmatpush1.bf16.msra.mxu1 %v3869_v18  ;;  %v3881_v35 = vld [vmem:[%s4715_s26 + $0xc8] ss:$16 sps:$4 sm:$0xff]   ;;  %v3882_v36 = vld [vmem:[%s4715_s26 + $0xec] ss:$16 sps:$4 sm:$0xff]   ;;  %v3917_v50 = vld [vmem:[%s4690_s18 + $0xa4] ss:$16 sps:$4 sm:$0xff]  }
  0x88   : > { %774 = vmatprep.subr.bf16.mxu0 %v3846_v7  ;;  %815 = vmatprep.subr.bf16.mxu1 %v3870_v19  ;;  %v3884_v39 = vld [vmem:[%s4715_s26 + $0xe8] ss:$16 sps:$4 sm:$0xff]   ;;  %v3908_v52 = vld [vmem:[%s4690_s18 + $0x6c] ss:$16 sps:$4 sm:$0xff]   ;;  %v3915_v53 = vld [vmem:[%s4690_s18 + $0xa0] ss:$16 sps:$4 sm:$0xff]  }
  0x89   : > { %v3900_v51 = vld [vmem:[%s4690_s18 + $0x48] ss:$16 sps:$4 sm:$0xff]   ;;  %v3923_v54 = vld [vmem:[%s4690_s18 + $0xc4] ss:$16 sps:$4 sm:$0xff]   ;;  %v3914_v56 = vld [vmem:[%s4690_s18 + $0x8c] ss:$16 sps:$4 sm:$0xff]  }
  0x8a   : > { %v3906_v55 = vld [vmem:[%s4690_s18 + $0x68] ss:$16 sps:$4 sm:$0xff]   ;;  %v3921_v57 = vld [vmem:[%s4690_s18 + $0xc0] ss:$16 sps:$4 sm:$0xff]   ;;  %v3929_v58 = vld [vmem:[%s4690_s18 + $0xe4] ss:$16 sps:$4 sm:$0xff]  }
  0x8b   : > { %775 = vmatpush1.bf16.msra.mxu0 %v3848_v8  ;;  %816 = vmatpush1.bf16.msra.mxu1 %v3872_v22  ;;  %v3912_v59 = vld [vmem:[%s4690_s18 + $0x88] ss:$16 sps:$4 sm:$0xff]   ;;  %v3920_v60 = vld [vmem:[%s4690_s18 + $0xac] ss:$16 sps:$4 sm:$0xff]   ;;  %v3927_v61 = vld [vmem:[%s4690_s18 + $0xe0] ss:$16 sps:$4 sm:$0xff]  }
  0x8c   : > { %776 = vmatprep.subr.bf16.mxu0 %v3849_v9  ;;  %817 = vmatprep.subr.bf16.mxu1 %v3873_v23  ;;  %v3935_v62 = vld [vmem:[%s4690_s18 + $0x104] ss:$16 sps:$4 sm:$0xff]   ;;  %v3918_v63 = vld [vmem:[%s4690_s18 + $0xa8] ss:$16 sps:$4 sm:$0xff]   ;;  %v3926_v0 = vld [vmem:[%s4690_s18 + $0xcc] ss:$16 sps:$4 sm:$0xff]  }
  0x8d   : > { %v3933_v1 = vld [vmem:[%s4690_s18 + $0x100] ss:$16 sps:$4 sm:$0xff]   ;;  %v3941_v2 = vld [vmem:[%s4690_s18 + $0x124] ss:$16 sps:$4 sm:$0xff]   ;;  %v3924_v3 = vld [vmem:[%s4690_s18 + $0xc8] ss:$16 sps:$4 sm:$0xff]  }
  0x8e   : > { %v3932_v4 = vld [vmem:[%s4690_s18 + $0xec] ss:$16 sps:$4 sm:$0xff]   ;;  %v3939_v5 = vld [vmem:[%s4690_s18 + $0x120] ss:$16 sps:$4 sm:$0xff]   ;;  %v3947_v6 = vld [vmem:[%s4690_s18 + $0x144] ss:$16 sps:$4 sm:$0xff]  }
  0x8f   : > { %777 = vmatpush1.bf16.msra.mxu0 %v3851_v13  ;;  %818 = vmatpush1.bf16.msra.mxu1 %v3875_v27  ;;  %v3930_v7 = vld [vmem:[%s4690_s18 + $0xe8] ss:$16 sps:$4 sm:$0xff]   ;;  %v3938_v8 = vld [vmem:[%s4690_s18 + $0x10c] ss:$16 sps:$4 sm:$0xff]   ;;  %v3945_v9 = vld [vmem:[%s4690_s18 + $0x140] ss:$16 sps:$4 sm:$0xff]  }
  0x90   : > { %778 = vmatprep.subr.bf16.mxu0 %v3852_v16  ;;  %819 = vmatprep.subr.bf16.mxu1 %v3876_v28  ;;  %v3953_v10 = vld [vmem:[%s4690_s18 + $0x164] ss:$16 sps:$4 sm:$0xff]   ;;  %v3936_v11 = vld [vmem:[%s4690_s18 + $0x108] ss:$16 sps:$4 sm:$0xff]   ;;  %v3944_v12 = vld [vmem:[%s4690_s18 + $0x12c] ss:$16 sps:$4 sm:$0xff]  }
  0x91   : > { %v3951_v13 = vld [vmem:[%s4690_s18 + $0x160] ss:$16 sps:$4 sm:$0xff]   ;;  %v3959_v14 = vld [vmem:[%s4690_s18 + $0x184] ss:$16 sps:$4 sm:$0xff]   ;;  %v3942_v15 = vld [vmem:[%s4690_s18 + $0x128] ss:$16 sps:$4 sm:$0xff]  }
  0x92   : > { %v3950_v16 = vld [vmem:[%s4690_s18 + $0x14c] ss:$16 sps:$4 sm:$0xff]   ;;  %v3965_v18 = vld [vmem:[%s4690_s18 + $0x1a4] ss:$16 sps:$4 sm:$0xff]   ;;  %v3948_v19 = vld [vmem:[%s4690_s18 + $0x148] ss:$16 sps:$4 sm:$0xff]  }
  0x93   : > { %779 = vmatpush1.bf16.msra.mxu0 %v3854_v17  ;;  %820 = vmatpush1.bf16.msra.mxu1 %v3878_v31  ;;  %v3957_v17 = vld [vmem:[%s4690_s18 + $0x180] ss:$16 sps:$4 sm:$0xff]   ;;  %v3954_v22 = vld [vmem:[%s4690_s18 + $0x168] ss:$16 sps:$4 sm:$0xff]   ;;  %v3962_v23 = vld [vmem:[%s4690_s18 + $0x18c] ss:$16 sps:$4 sm:$0xff]  }
  0x94   : > { %780 = vmatprep.subr.bf16.mxu0 %v3855_v20  ;;  %821 = vmatprep.subr.bf16.mxu1 %v3879_v32  ;;  %v3956_v20 = vld [vmem:[%s4690_s18 + $0x16c] ss:$16 sps:$4 sm:$0xff]   ;;  %v3966_v26 = vld [vmem:[%s4690_s18 + $0x1a8] ss:$16 sps:$4 sm:$0xff]   ;;  %v3971_v27 = vld [vmem:[%s4690_s18 + $0x1c4] ss:$16 sps:$4 sm:$0xff]  }
  0x95   : > { %v3974_v28 = vld [vmem:[%s4690_s18 + $0x1cc] ss:$16 sps:$4 sm:$0xff]   ;;  %v3977_v31 = vld [vmem:[%s4690_s18 + $0x1e4] ss:$16 sps:$4 sm:$0xff]   ;;  %s3366_s17 = sshll.u32 %s4706_s11, 2  ;;  %p3692_p2 = scmp.ne.s32.totalorder %s4441_s12, 0 }
  0x96   : > { %v3980_v32 = vld [vmem:[%s4690_s18 + $0x1ec] ss:$16 sps:$4 sm:$0xff]   ;;  %s531_s30 = scalar_lea.vmem %s5136_s2, %s3366_s17  ;;  %s535_s23 = scalar_lea.vmem %s5138_s4, %s3366_s17  ;;  %vm3129_vm0 = vcmask (!%p3692_p2), 31744  }
  0x97   : > { %781 = vmatpush1.bf16.msra.mxu0 %v3857_v21  ;;  %822 = vmatpush1.bf16.msra.mxu1 %v3881_v35  ;;  %v3963_v21 = vld [vmem:[%s4690_s18 + $0x1a0] ss:$16 sps:$4 sm:$0xff]   ;;  %v3983_v35 = vld [vmem:[%s4690_s18 + $0x204] ss:$16 sps:$4 sm:$0xff]  }
  0x98   : > { %782 = vmatprep.subr.bf16.mxu0 %v3858_v24  ;;  %823 = vmatprep.subr.bf16.mxu1 %v3882_v36  ;;  %v3960_v24 = vld [vmem:[%s4690_s18 + $0x188] ss:$16 sps:$4 sm:$0xff]   ;;  %v3986_v36 = vld [vmem:[%s4690_s18 + $0x20c] ss:$16 sps:$4 sm:$0xff]  }
  0x9b   : > { %783 = vmatpush1.bf16.msra.mxu0 %v3860_v25  ;;  %824 = vmatpush1.bf16.msra.mxu1 %v3884_v39  ;;  %v3968_v25 = vld [vmem:[%s4690_s18 + $0x1ac] ss:$16 sps:$4 sm:$0xff]  }
  0x9c   : > { %1648 = vmatprep.subr.bf16.mxu0 %v3887_v29  ;;  %1730 = vmatprep.subr.bf16.mxu1 %v3890_v40  ;;  %v3969_v29 = vld [vmem:[%s4690_s18 + $0x1c0] ss:$16 sps:$4 sm:$0xff]  }
  0x9d   : > { %v4841_v40 = vld [vmem:[%s531_s30] sm:$0xf] }
  0x9e   : > { %801 = vmatmul.mubr.bf16.vlgmr.msra.gmra.mrb[0].mxu0 %v553_v30  ;;  %842 = vmatmul.mubr.bf16.vlgmr.msra.gmra.mrb[0].mxu1 %v553_v30  ;;  %v3972_v30 = vld [vmem:[%s4690_s18 + $0x1c8] ss:$16 sps:$4 sm:$0xff]  }
  0x9f   : > { %1649 = vmatpush1.bf16.msra.mxu0 %v3885_v33  ;;  %1731 = vmatpush1.bf16.msra.mxu1 %v3888_v43  ;;  %v3975_v33 = vld [vmem:[%s4690_s18 + $0x1e0] ss:$16 sps:$4 sm:$0xff]  }
  0xa0   : > { %1650 = vmatprep.subr.bf16.mxu0 %v3893_v34  ;;  %1732 = vmatprep.subr.bf16.mxu1 %v3896_v44  ;;  %v3978_v34 = vld [vmem:[%s4690_s18 + $0x1e8] ss:$16 sps:$4 sm:$0xff]  }
  0xa3   : > { %1651 = vmatpush1.bf16.msra.mxu0 %v3891_v37  ;;  %1733 = vmatpush1.bf16.msra.mxu1 %v3894_v47  ;;  %v588_v37 = vlaneseq }
  0xa4   : > { %1652 = vmatprep.subr.bf16.mxu0 %v3899_v38  ;;  %1734 = vmatprep.subr.bf16.mxu1 %v3902_v48 }
  0xa5   : > { %v4831_v38 = vshrl.u32 %v588_v37, 7  ;;  %v4043_v37 = vld [vmem:[%s4690_s18 + $0x344] ss:$16 sps:$4 sm:$0xff]  }
  0xa7   : > { %1653 = vmatpush1.bf16.msra.mxu0 %v3897_v41  ;;  %1735 = vmatpush1.bf16.msra.mxu1 %v3900_v51  ;;  %v4839_v39 = vsub.s32 0, %v4831_v38  ;;  %v4844_v41 = vsub.s32 1, %v4831_v38 }
  0xa8   : > { %1654 = vmatprep.subr.bf16.mxu0 %v3905_v42  ;;  %1736 = vmatprep.subr.bf16.mxu1 %v3908_v52  ;;  %v4851_v52 = vsub.s32 3, %v4831_v38 }
  0xa9   : > { %v591_v42 = vrot.slane %v4841_v40, %v4839_v39  ;;  %v595_v43 = vrot.slane %v4841_v40, %v4844_v41 }
  0xab   : > { %1655 = vmatpush1.bf16.msra.mxu0 %v3903_v45  ;;  %1737 = vmatpush1.bf16.msra.mxu1 %v3906_v55  ;;  %v3984_v55 = vld [vmem:[%s4690_s18 + $0x208] ss:$16 sps:$4 sm:$0xff]  }
  0xac   : > { %1656 = vmatprep.subr.bf16.mxu0 %v3911_v46  ;;  %1738 = vmatprep.subr.bf16.mxu1 %v3914_v56 }
  0xaf   : > { %1657 = vmatpush1.bf16.msra.mxu0 %v3909_v49  ;;  %1739 = vmatpush1.bf16.msra.mxu1 %v3912_v59  ;;  %v603_v59 = vrot.slane %v4841_v40, %v4851_v52 }
  0xb0   : > { %1658 = vmatprep.subr.bf16.mxu0 %v3917_v50  ;;  %1740 = vmatprep.subr.bf16.mxu1 %v3920_v60  ;;  %v3987_v60 = vld [vmem:[%s4690_s18 + $0x220] ss:$16 sps:$4 sm:$0xff]  }
  0xb3   : > { %1659 = vmatpush1.bf16.msra.mxu0 %v3915_v53  ;;  %1741 = vmatpush1.bf16.msra.mxu1 %v3918_v63  ;;  %v3998_v63 = vld [vmem:[%s4690_s18 + $0x24c] ss:$16 sps:$4 sm:$0xff]  }
  0xb4   : > { %1660 = vmatprep.subr.bf16.mxu0 %v3923_v54  ;;  %1742 = vmatprep.subr.bf16.mxu1 %v3926_v0  ;;  %v3981_v54 = vld [vmem:[%s4690_s18 + $0x200] ss:$16 sps:$4 sm:$0xff]  }
  0xb7   : > { %1661 = vmatpush1.bf16.msra.mxu0 %v3921_v57  ;;  %1743 = vmatpush1.bf16.msra.mxu1 %v3924_v3  ;;  %v3989_v57 = vld [vmem:[%s4690_s18 + $0x224] ss:$16 sps:$4 sm:$0xff]  }
  0xb8   : > { %1662 = vmatprep.subr.bf16.mxu0 %v3929_v58  ;;  %1744 = vmatprep.subr.bf16.mxu1 %v3932_v4  ;;  %v3992_v58 = vld [vmem:[%s4690_s18 + $0x22c] ss:$16 sps:$4 sm:$0xff]   ;;  %v3993_v4 = vld [vmem:[%s4690_s18 + $0x240] ss:$16 sps:$4 sm:$0xff]  }
  0xbb   : > { %1663 = vmatpush1.bf16.msra.mxu0 %v3927_v61  ;;  %1745 = vmatpush1.bf16.msra.mxu1 %v3930_v7  ;;  %v3990_v61 = vld [vmem:[%s4690_s18 + $0x228] ss:$16 sps:$4 sm:$0xff]   ;;  %v4001_v7 = vld [vmem:[%s4690_s18 + $0x264] ss:$16 sps:$4 sm:$0xff]  }
  0xbc   : > { %1664 = vmatprep.subr.bf16.mxu0 %v3935_v62  ;;  %1746 = vmatprep.subr.bf16.mxu1 %v3938_v8  ;;  %v3995_v62 = vld [vmem:[%s4690_s18 + $0x244] ss:$16 sps:$4 sm:$0xff]   ;;  %v4004_v8 = vld [vmem:[%s4690_s18 + $0x26c] ss:$16 sps:$4 sm:$0xff]  }
  0xbf   : > { %1665 = vmatpush1.bf16.msra.mxu0 %v3933_v1  ;;  %1747 = vmatpush1.bf16.msra.mxu1 %v3936_v11  ;;  %v3999_v11 = vld [vmem:[%s4690_s18 + $0x260] ss:$16 sps:$4 sm:$0xff]  }
  0xc0   : > { %1666 = vmatprep.subr.bf16.mxu0 %v3941_v2  ;;  %1748 = vmatprep.subr.bf16.mxu1 %v3944_v12  ;;  %v4002_v12 = vld [vmem:[%s4690_s18 + $0x268] ss:$16 sps:$4 sm:$0xff]  }
  0xc3   : > { %1667 = vmatpush1.bf16.msra.mxu0 %v3939_v5  ;;  %1749 = vmatpush1.bf16.msra.mxu1 %v3942_v15  ;;  %v3996_v5 = vld [vmem:[%s4690_s18 + $0x248] ss:$16 sps:$4 sm:$0xff]   ;;  %v4005_v15 = vld [vmem:[%s4690_s18 + $0x280] ss:$16 sps:$4 sm:$0xff]  }
  0xc4   : > { %1668 = vmatprep.subr.bf16.mxu0 %v3947_v6  ;;  %1750 = vmatprep.subr.bf16.mxu1 %v3950_v16  ;;  %v4008_v16 = vld [vmem:[%s4690_s18 + $0x288] ss:$16 sps:$4 sm:$0xff]  }
  0xc7   : > { %1669 = vmatpush1.bf16.msra.mxu0 %v3945_v9  ;;  %1751 = vmatpush1.bf16.msra.mxu1 %v3948_v19  ;;  %v4011_v19 = vld [vmem:[%s4690_s18 + $0x2a0] ss:$16 sps:$4 sm:$0xff]  }
  0xc8   : > { %1670 = vmatprep.subr.bf16.mxu0 %v3953_v10  ;;  %1752 = vmatprep.subr.bf16.mxu1 %v3956_v20  ;;  %v4014_v20 = vld [vmem:[%s4690_s18 + $0x2a8] ss:$16 sps:$4 sm:$0xff]  }
  0xcb   : > { %1671 = vmatpush1.bf16.msra.mxu0 %v3951_v13  ;;  %1753 = vmatpush1.bf16.msra.mxu1 %v3954_v22  ;;  %v4007_v13 = vld [vmem:[%s4690_s18 + $0x284] ss:$16 sps:$4 sm:$0xff]   ;;  %v4022_v22 = vld [vmem:[%s4690_s18 + $0x2cc] ss:$16 sps:$4 sm:$0xff]  }
  0xcc   : > { %1672 = vmatprep.subr.bf16.mxu0 %v3959_v14  ;;  %1754 = vmatprep.subr.bf16.mxu1 %v3962_v23  ;;  %v4010_v14 = vld [vmem:[%s4690_s18 + $0x28c] ss:$16 sps:$4 sm:$0xff]   ;;  %v4017_v23 = vld [vmem:[%s4690_s18 + $0x2c0] ss:$16 sps:$4 sm:$0xff]  }
  0xcf   : > { %1673 = vmatpush1.bf16.msra.mxu0 %v3957_v17  ;;  %1755 = vmatpush1.bf16.msra.mxu1 %v3960_v24  ;;  %v4013_v17 = vld [vmem:[%s4690_s18 + $0x2a4] ss:$16 sps:$4 sm:$0xff]   ;;  %v4020_v24 = vld [vmem:[%s4690_s18 + $0x2c8] ss:$16 sps:$4 sm:$0xff]  }
  0xd0   : > { %1674 = vmatprep.subr.bf16.mxu0 %v3965_v18  ;;  %1756 = vmatprep.subr.bf16.mxu1 %v3968_v25  ;;  %v4016_v18 = vld [vmem:[%s4690_s18 + $0x2ac] ss:$16 sps:$4 sm:$0xff]   ;;  %v4025_v25 = vld [vmem:[%s4690_s18 + $0x2e4] ss:$16 sps:$4 sm:$0xff]  }
  0xd3   : > { %1675 = vmatpush1.bf16.msra.mxu0 %v3963_v21  ;;  %1757 = vmatpush1.bf16.msra.mxu1 %v3966_v26  ;;  %v4019_v21 = vld [vmem:[%s4690_s18 + $0x2c4] ss:$16 sps:$4 sm:$0xff]   ;;  %v4028_v26 = vld [vmem:[%s4690_s18 + $0x2ec] ss:$16 sps:$4 sm:$0xff]  }
  0xd4   : > { %1676 = vmatprep.subr.bf16.mxu0 %v3971_v27  ;;  %1758 = vmatprep.subr.bf16.mxu1 %v3974_v28  ;;  %v4023_v27 = vld [vmem:[%s4690_s18 + $0x2e0] ss:$16 sps:$4 sm:$0xff]   ;;  %v4026_v28 = vld [vmem:[%s4690_s18 + $0x2e8] ss:$16 sps:$4 sm:$0xff]  }
  0xd7   : > { %1677 = vmatpush1.bf16.msra.mxu0 %v3969_v29  ;;  %1759 = vmatpush1.bf16.msra.mxu1 %v3972_v30  ;;  %v4031_v29 = vld [vmem:[%s4690_s18 + $0x304] ss:$16 sps:$4 sm:$0xff]   ;;  %v4034_v30 = vld [vmem:[%s4690_s18 + $0x30c] ss:$16 sps:$4 sm:$0xff]  }
  0xd8   : > { %1678 = vmatprep.subr.bf16.mxu0 %v3977_v31  ;;  %1760 = vmatprep.subr.bf16.mxu1 %v3980_v32  ;;  %v4029_v31 = vld [vmem:[%s4690_s18 + $0x300] ss:$16 sps:$4 sm:$0xff]   ;;  %v4032_v32 = vld [vmem:[%s4690_s18 + $0x308] ss:$16 sps:$4 sm:$0xff]  }
  0xdb   : > { %1679 = vmatpush1.bf16.msra.mxu0 %v3975_v33  ;;  %1761 = vmatpush1.bf16.msra.mxu1 %v3978_v34  ;;  %v4037_v33 = vld [vmem:[%s4690_s18 + $0x324] ss:$16 sps:$4 sm:$0xff]   ;;  %v4040_v34 = vld [vmem:[%s4690_s18 + $0x32c] ss:$16 sps:$4 sm:$0xff]  }
  0xdc   : > { %1689 = vmatprep.subr.bf16.mxu0 %v3983_v35  ;;  %1771 = vmatprep.subr.bf16.mxu1 %v3986_v36  ;;  %v4035_v35 = vld [vmem:[%s4690_s18 + $0x320] ss:$16 sps:$4 sm:$0xff]   ;;  %v4038_v36 = vld [vmem:[%s4690_s18 + $0x328] ss:$16 sps:$4 sm:$0xff]  }
 0x171   : > { %v802_v44 = vpop.f32.mrb[0].mxu0  ;;  %v4863_v0 = vpop.f32.mrb[0].mxu1 }
 0x172   : > { %v803_v45 = vadd.f32 %v802_v44, %v591_v42  ;;  %v804_v46 = vpop.f32.mrb[1].mxu0  ;;  %v845_v1 = vpop.f32.mrb[1].mxu1  ;;  %v4046_v42 = vld [vmem:[%s4690_s18 + $0x34c] ss:$16 sps:$4 sm:$0xff]   ;;  %v4044_v44 = vld [vmem:[%s4690_s18 + $0x348] ss:$16 sps:$4 sm:$0xff]  }
 0x173   : > { %v805_v47 = vadd.f32 %v804_v46, %v595_v43  ;;  %v806_v48 = vpop.f32.mrb[2].mxu0  ;;  %v846_v2 = vadd.f32 %v845_v1, %v603_v59  ;;  %v847_v3 = vpop.f32.mrb[2].mxu1  ;;  %v4041_v43 = vld [vmem:[%s4690_s18 + $0x340] ss:$16 sps:$4 sm:$0xff]   ;;  %v4052_v46 = vld [vmem:[%s4690_s18 + $0x36c] ss:$16 sps:$4 sm:$0xff]  }
 0x174   : > { %v850_v49 = vmax.f32 %v803_v45, 0.0  ;;  %v807_v50 = vpop.f32.mrb[3].mxu0  ;;  %v848_v6 = vpop.f32.mrb[3].mxu1  ;;  %v4049_v45 = vld [vmem:[%s4690_s18 + $0x364] ss:$16 sps:$4 sm:$0xff]  }
 0x175   : > { %v851_v51 = vmax.f32 %v805_v47, 0.0  ;;  %v853_v9 = vmax.f32 %v846_v2, 0.0  ;;  %v4047_v47 = vld [vmem:[%s4690_s18 + $0x360] ss:$16 sps:$4 sm:$0xff]   ;;  %v4050_v48 = vld [vmem:[%s4690_s18 + $0x368] ss:$16 sps:$4 sm:$0xff]  }
 0x176   : > { %v854_v56 = vpack.c.bf16 %v850_v49, %v850_v49  ;;  %v4055_v49 = vld [vmem:[%s4690_s18 + $0x384] ss:$16 sps:$4 sm:$0xff]   ;;  %v4058_v50 = vld [vmem:[%s4690_s18 + $0x38c] ss:$16 sps:$4 sm:$0xff]   ;;  %v4071_v2 = vld [vmem:[%s4690_s18 + $0x3e0] ss:$16 sps:$4 sm:$0xff]  }
 0x177   : > { %v855_v53 = vpack.c.bf16 %v851_v51, %v851_v51  ;;  %v857_v10 = vpack.c.bf16 %v853_v9, %v853_v9  ;;  %v4053_v51 = vld [vmem:[%s4690_s18 + $0x380] ss:$16 sps:$4 sm:$0xff]   ;;  %v4073_v1 = vld [vmem:[%s4690_s18 + $0x3e4] ss:$16 sps:$4 sm:$0xff]   ;;  %v4074_v3 = vld [vmem:[%s4690_s18 + $0x3e8] ss:$16 sps:$4 sm:$0xff]  }
 0x178   : > { %v4082_v6 = vld [vmem:[%s4698_s5 + $0xc] ss:$16 sps:$4 sm:$0xff]   ;;  %v4085_v9 = vld [vmem:[%s4698_s5 + $0x24] ss:$16 sps:$4 sm:$0xff]  }
 0x179   : > { %1680 = vmatprep.mubr.bf16.mxu0 %v855_v53  ;;  %1762 = vmatprep.mubr.bf16.mxu1 %v855_v53  ;;  %v4056_v53 = vld [vmem:[%s4690_s18 + $0x388] ss:$16 sps:$4 sm:$0xff]  }
 0x17a   : > { %1681 = vmatmul.mubr.bf16.vlgmr.msra.gmra.mrb[4].mxu0 %v854_v56  ;;  %1763 = vmatmul.mubr.bf16.vlgmr.msra.gmra.mrb[4].mxu1 %v854_v56  ;;  %v4064_v56 = vld [vmem:[%s4690_s18 + $0x3ac] ss:$16 sps:$4 sm:$0xff]  }
 0x17b   : > { %1690 = vmatpush1.bf16.msra.mxu0 %v3981_v54  ;;  %1772 = vmatpush1.bf16.msra.mxu1 %v3984_v55  ;;  %v4908_v54 = vsub.s32 2, %v4831_v38  ;;  %v4061_v55 = vld [vmem:[%s4690_s18 + $0x3a4] ss:$16 sps:$4 sm:$0xff]   ;;  %v4065_v38 = vld [vmem:[%s4690_s18 + $0x3c0] ss:$16 sps:$4 sm:$0xff]  }
 0x17c   : > { %1691 = vmatprep.subr.bf16.mxu0 %v3989_v57  ;;  %1773 = vmatprep.subr.bf16.mxu1 %v3992_v58  ;;  %v4059_v57 = vld [vmem:[%s4690_s18 + $0x3a0] ss:$16 sps:$4 sm:$0xff]   ;;  %v4062_v58 = vld [vmem:[%s4690_s18 + $0x3a8] ss:$16 sps:$4 sm:$0xff]  }
 0x17d   : > { %1721 = vmatprep.mubr.bf16.mxu0 %v857_v10  ;;  %1803 = vmatprep.mubr.bf16.mxu1 %v857_v10  ;;  %v599_v59 = vrot.slane %v4841_v40, %v4908_v54  ;;  %v4076_v40 = vld [vmem:[%s4690_s18 + $0x3ec] ss:$16 sps:$4 sm:$0xff]  }
 0x17e   : > { %v4088_v10 = vld [vmem:[%s4698_s5 + $0x2c] ss:$16 sps:$4 sm:$0xff]  }
 0x17f   : > { %1692 = vmatpush1.bf16.msra.mxu0 %v3987_v60  ;;  %1774 = vmatpush1.bf16.msra.mxu1 %v3990_v61  ;;  %v4067_v60 = vld [vmem:[%s4690_s18 + $0x3c4] ss:$16 sps:$4 sm:$0xff]   ;;  %v4070_v61 = vld [vmem:[%s4690_s18 + $0x3cc] ss:$16 sps:$4 sm:$0xff]  }
 0x180   : > { %1693 = vmatprep.subr.bf16.mxu0 %v3995_v62  ;;  %1775 = vmatprep.subr.bf16.mxu1 %v3998_v63  ;;  %v4068_v62 = vld [vmem:[%s4690_s18 + $0x3c8] ss:$16 sps:$4 sm:$0xff]   ;;  %v844_v63 = vadd.f32 %v4863_v0, %v599_v59  ;;  %v4077_v0 = vld [vmem:[%s4698_s5] ss:$16 sps:$4 sm:$0xff]   ;;  %v4151_v59 = vld [vmem:[%s4698_s5 + $0x184] ss:$16 sps:$4 sm:$0xff]  }
 0x183   : > { %1694 = vmatpush1.bf16.msra.mxu0 %v3993_v4  ;;  %1776 = vmatpush1.bf16.msra.mxu1 %v3996_v5  ;;  %v852_v4 = vmax.f32 %v844_v63, 0.0  ;;  %v4079_v5 = vld [vmem:[%s4698_s5 + $0x4] ss:$16 sps:$4 sm:$0xff]   ;;  %v4160_v63 = vld [vmem:[%s4698_s5 + $0x1ac] ss:$16 sps:$4 sm:$0xff]  }
 0x184   : > { %1695 = vmatprep.subr.bf16.mxu0 %v4001_v7  ;;  %1777 = vmatprep.subr.bf16.mxu1 %v4004_v8  ;;  %v4080_v7 = vld [vmem:[%s4698_s5 + $0x8] ss:$16 sps:$4 sm:$0xff]  }
 0x185   : > { %v856_v8 = vpack.c.bf16 %v852_v4, %v852_v4  ;;  %v4161_v4 = vld [vmem:[%s4698_s5 + $0x1c0] ss:$16 sps:$4 sm:$0xff]  }
 0x187   : > { %1696 = vmatpush1.bf16.msra.mxu0 %v3999_v11  ;;  %1778 = vmatpush1.bf16.msra.mxu1 %v4002_v12  ;;  %v4083_v11 = vld [vmem:[%s4698_s5 + $0x20] ss:$16 sps:$4 sm:$0xff]   ;;  %v4086_v12 = vld [vmem:[%s4698_s5 + $0x28] ss:$16 sps:$4 sm:$0xff]  }
 0x188   : > { %1697 = vmatprep.subr.bf16.mxu0 %v4007_v13  ;;  %1779 = vmatprep.subr.bf16.mxu1 %v4010_v14  ;;  %v4091_v13 = vld [vmem:[%s4698_s5 + $0x44] ss:$16 sps:$4 sm:$0xff]   ;;  %v4094_v14 = vld [vmem:[%s4698_s5 + $0x4c] ss:$16 sps:$4 sm:$0xff]  }
 0x18b   : > { %1698 = vmatpush1.bf16.msra.mxu0 %v4005_v15  ;;  %1780 = vmatpush1.bf16.msra.mxu1 %v4008_v16  ;;  %v4089_v15 = vld [vmem:[%s4698_s5 + $0x40] ss:$16 sps:$4 sm:$0xff]   ;;  %v4092_v16 = vld [vmem:[%s4698_s5 + $0x48] ss:$16 sps:$4 sm:$0xff]  }
 0x18c   : > { %1699 = vmatprep.subr.bf16.mxu0 %v4013_v17  ;;  %1781 = vmatprep.subr.bf16.mxu1 %v4016_v18  ;;  %v4097_v17 = vld [vmem:[%s4698_s5 + $0x64] ss:$16 sps:$4 sm:$0xff]   ;;  %v4100_v18 = vld [vmem:[%s4698_s5 + $0x6c] ss:$16 sps:$4 sm:$0xff]  }
 0x18f   : > { %1700 = vmatpush1.bf16.msra.mxu0 %v4011_v19  ;;  %1782 = vmatpush1.bf16.msra.mxu1 %v4014_v20  ;;  %v4095_v19 = vld [vmem:[%s4698_s5 + $0x60] ss:$16 sps:$4 sm:$0xff]   ;;  %v4098_v20 = vld [vmem:[%s4698_s5 + $0x68] ss:$16 sps:$4 sm:$0xff]  }
 0x190   : > { %1701 = vmatprep.subr.bf16.mxu0 %v4019_v21  ;;  %1783 = vmatprep.subr.bf16.mxu1 %v4022_v22  ;;  %v4103_v21 = vld [vmem:[%s4698_s5 + $0x84] ss:$16 sps:$4 sm:$0xff]   ;;  %v4106_v22 = vld [vmem:[%s4698_s5 + $0x8c] ss:$16 sps:$4 sm:$0xff]  }
 0x193   : > { %1702 = vmatpush1.bf16.msra.mxu0 %v4017_v23  ;;  %1784 = vmatpush1.bf16.msra.mxu1 %v4020_v24  ;;  %v4101_v23 = vld [vmem:[%s4698_s5 + $0x80] ss:$16 sps:$4 sm:$0xff]   ;;  %v4104_v24 = vld [vmem:[%s4698_s5 + $0x88] ss:$16 sps:$4 sm:$0xff]  }
 0x194   : > { %1703 = vmatprep.subr.bf16.mxu0 %v4025_v25  ;;  %1785 = vmatprep.subr.bf16.mxu1 %v4028_v26  ;;  %v4109_v25 = vld [vmem:[%s4698_s5 + $0xa4] ss:$16 sps:$4 sm:$0xff]   ;;  %v4112_v26 = vld [vmem:[%s4698_s5 + $0xac] ss:$16 sps:$4 sm:$0xff]  }
 0x197   : > { %1704 = vmatpush1.bf16.msra.mxu0 %v4023_v27  ;;  %1786 = vmatpush1.bf16.msra.mxu1 %v4026_v28  ;;  %v4107_v27 = vld [vmem:[%s4698_s5 + $0xa0] ss:$16 sps:$4 sm:$0xff]   ;;  %v4110_v28 = vld [vmem:[%s4698_s5 + $0xa8] ss:$16 sps:$4 sm:$0xff]  }
 0x198   : > { %1705 = vmatprep.subr.bf16.mxu0 %v4031_v29  ;;  %1787 = vmatprep.subr.bf16.mxu1 %v4034_v30  ;;  %v4115_v29 = vld [vmem:[%s4698_s5 + $0xc4] ss:$16 sps:$4 sm:$0xff]   ;;  %v4118_v30 = vld [vmem:[%s4698_s5 + $0xcc] ss:$16 sps:$4 sm:$0xff]  }
 0x19b   : > { %1706 = vmatpush1.bf16.msra.mxu0 %v4029_v31  ;;  %1788 = vmatpush1.bf16.msra.mxu1 %v4032_v32  ;;  %v4113_v31 = vld [vmem:[%s4698_s5 + $0xc0] ss:$16 sps:$4 sm:$0xff]   ;;  %v4116_v32 = vld [vmem:[%s4698_s5 + $0xc8] ss:$16 sps:$4 sm:$0xff]  }
 0x19c   : > { %1707 = vmatprep.subr.bf16.mxu0 %v4037_v33  ;;  %1789 = vmatprep.subr.bf16.mxu1 %v4040_v34  ;;  %v4121_v33 = vld [vmem:[%s4698_s5 + $0xe4] ss:$16 sps:$4 sm:$0xff]   ;;  %v4124_v34 = vld [vmem:[%s4698_s5 + $0xec] ss:$16 sps:$4 sm:$0xff]  }
 0x19f   : > { %1708 = vmatpush1.bf16.msra.mxu0 %v4035_v35  ;;  %1790 = vmatpush1.bf16.msra.mxu1 %v4038_v36  ;;  %v4119_v35 = vld [vmem:[%s4698_s5 + $0xe0] ss:$16 sps:$4 sm:$0xff]   ;;  %v4122_v36 = vld [vmem:[%s4698_s5 + $0xe8] ss:$16 sps:$4 sm:$0xff]  }
 0x1a0   : > { %1709 = vmatprep.subr.bf16.mxu0 %v4043_v37  ;;  %1791 = vmatprep.subr.bf16.mxu1 %v4046_v42  ;;  %v4127_v37 = vld [vmem:[%s4698_s5 + $0x104] ss:$16 sps:$4 sm:$0xff]   ;;  %v4130_v42 = vld [vmem:[%s4698_s5 + $0x10c] ss:$16 sps:$4 sm:$0xff]  }
 0x1a3   : > { %1710 = vmatpush1.bf16.msra.mxu0 %v4041_v43  ;;  %1792 = vmatpush1.bf16.msra.mxu1 %v4044_v44  ;;  %v4125_v43 = vld [vmem:[%s4698_s5 + $0x100] ss:$16 sps:$4 sm:$0xff]   ;;  %v4128_v44 = vld [vmem:[%s4698_s5 + $0x108] ss:$16 sps:$4 sm:$0xff]  }
 0x1a4   : > { %1711 = vmatprep.subr.bf16.mxu0 %v4049_v45  ;;  %1793 = vmatprep.subr.bf16.mxu1 %v4052_v46  ;;  %v4133_v45 = vld [vmem:[%s4698_s5 + $0x124] ss:$16 sps:$4 sm:$0xff]   ;;  %v4136_v46 = vld [vmem:[%s4698_s5 + $0x12c] ss:$16 sps:$4 sm:$0xff]  }
 0x1a7   : > { %1712 = vmatpush1.bf16.msra.mxu0 %v4047_v47  ;;  %1794 = vmatpush1.bf16.msra.mxu1 %v4050_v48  ;;  %v4131_v47 = vld [vmem:[%s4698_s5 + $0x120] ss:$16 sps:$4 sm:$0xff]   ;;  %v4134_v48 = vld [vmem:[%s4698_s5 + $0x128] ss:$16 sps:$4 sm:$0xff]  }
 0x1a8   : > { %1713 = vmatprep.subr.bf16.mxu0 %v4055_v49  ;;  %1795 = vmatprep.subr.bf16.mxu1 %v4058_v50  ;;  %v4139_v49 = vld [vmem:[%s4698_s5 + $0x144] ss:$16 sps:$4 sm:$0xff]   ;;  %v4142_v50 = vld [vmem:[%s4698_s5 + $0x14c] ss:$16 sps:$4 sm:$0xff]  }
 0x1ab   : > { %1714 = vmatpush1.bf16.msra.mxu0 %v4053_v51  ;;  %1796 = vmatpush1.bf16.msra.mxu1 %v4056_v53  ;;  %v4137_v51 = vld [vmem:[%s4698_s5 + $0x140] ss:$16 sps:$4 sm:$0xff]   ;;  %v4140_v53 = vld [vmem:[%s4698_s5 + $0x148] ss:$16 sps:$4 sm:$0xff]  }
 0x1ac   : > { %1715 = vmatprep.subr.bf16.mxu0 %v4061_v55  ;;  %1797 = vmatprep.subr.bf16.mxu1 %v4064_v56  ;;  %v4145_v55 = vld [vmem:[%s4698_s5 + $0x164] ss:$16 sps:$4 sm:$0xff]   ;;  %v4148_v56 = vld [vmem:[%s4698_s5 + $0x16c] ss:$16 sps:$4 sm:$0xff]  }
 0x1af   : > { %1716 = vmatpush1.bf16.msra.mxu0 %v4059_v57  ;;  %1798 = vmatpush1.bf16.msra.mxu1 %v4062_v58  ;;  %v4143_v57 = vld [vmem:[%s4698_s5 + $0x160] ss:$16 sps:$4 sm:$0xff]   ;;  %v4146_v58 = vld [vmem:[%s4698_s5 + $0x168] ss:$16 sps:$4 sm:$0xff]  }
 0x1b0   : > { %1717 = vmatprep.subr.bf16.mxu0 %v4067_v60  ;;  %1799 = vmatprep.subr.bf16.mxu1 %v4070_v61  ;;  %v4154_v60 = vld [vmem:[%s4698_s5 + $0x18c] ss:$16 sps:$4 sm:$0xff]   ;;  %v4149_v61 = vld [vmem:[%s4698_s5 + $0x180] ss:$16 sps:$4 sm:$0xff]  }
 0x1b3   : > { %1718 = vmatpush1.bf16.msra.mxu0 %v4065_v38  ;;  %1800 = vmatpush1.bf16.msra.mxu1 %v4068_v62  ;;  %v4152_v38 = vld [vmem:[%s4698_s5 + $0x188] ss:$16 sps:$4 sm:$0xff]   ;;  %v4157_v62 = vld [vmem:[%s4698_s5 + $0x1a4] ss:$16 sps:$4 sm:$0xff]  }
 0x1b4   : > { %1719 = vmatprep.subr.bf16.mxu0 %v4073_v1  ;;  %1801 = vmatprep.subr.bf16.mxu1 %v4076_v40  ;;  %v4155_v1 = vld [vmem:[%s4698_s5 + $0x1a0] ss:$16 sps:$4 sm:$0xff]   ;;  %v4158_v40 = vld [vmem:[%s4698_s5 + $0x1a8] ss:$16 sps:$4 sm:$0xff]  }
 0x1b7   : > { %1720 = vmatpush1.bf16.msra.mxu0 %v4071_v2  ;;  %1802 = vmatpush1.bf16.msra.mxu1 %v4074_v3  ;;  %v4163_v2 = vld [vmem:[%s4698_s5 + $0x1c4] ss:$16 sps:$4 sm:$0xff]   ;;  %v4166_v3 = vld [vmem:[%s4698_s5 + $0x1cc] ss:$16 sps:$4 sm:$0xff]  }
 0x1b8   : > { %2610 = vmatprep.subr.bf16.mxu0 %v4079_v5  ;;  %2692 = vmatprep.subr.bf16.mxu1 %v4082_v6  ;;  %v4164_v5 = vld [vmem:[%s4698_s5 + $0x1c8] ss:$16 sps:$4 sm:$0xff]   ;;  %v4169_v6 = vld [vmem:[%s4698_s5 + $0x1e4] ss:$16 sps:$4 sm:$0xff]  }
 0x1ba   : > { %1722 = vmatmul.mubr.bf16.vlgmr.msra.gmra.mrb[4].mxu0 %v856_v8  ;;  %1804 = vmatmul.mubr.bf16.vlgmr.msra.gmra.mrb[4].mxu1 %v856_v8  ;;  %v4170_v8 = vld [vmem:[%s4698_s5 + $0x1e8] ss:$16 sps:$4 sm:$0xff]  }
 0x1bb   : > { %2611 = vmatpush1.bf16.msra.mxu0 %v4077_v0  ;;  %2693 = vmatpush1.bf16.msra.mxu1 %v4080_v7  ;;  %v4172_v0 = vld [vmem:[%s4698_s5 + $0x1ec] ss:$16 sps:$4 sm:$0xff]   ;;  %v4167_v7 = vld [vmem:[%s4698_s5 + $0x1e0] ss:$16 sps:$4 sm:$0xff]  }
 0x1bc   : > { %2612 = vmatprep.subr.bf16.mxu0 %v4085_v9  ;;  %2694 = vmatprep.subr.bf16.mxu1 %v4088_v10  ;;  %v4175_v9 = vld [vmem:[%s4698_s5 + $0x204] ss:$16 sps:$4 sm:$0xff]   ;;  %v4178_v10 = vld [vmem:[%s4698_s5 + $0x20c] ss:$16 sps:$4 sm:$0xff]  }
 0x1bf   : > { %2613 = vmatpush1.bf16.msra.mxu0 %v4083_v11  ;;  %2695 = vmatpush1.bf16.msra.mxu1 %v4086_v12  ;;  %v4996_v11 = vld [vmem:[%s535_s23] sm:$0xf] }
 0x1c0   : > { %2614 = vmatprep.subr.bf16.mxu0 %v4091_v13  ;;  %2696 = vmatprep.subr.bf16.mxu1 %v4094_v14  ;;  %v991_v12 = vrot.slane %v4996_v11, %v4839_v39  ;;  %v995_v13 = vrot.slane %v4996_v11, %v4844_v41  ;;  %v1003_v14 = vrot.slane %v4996_v11, %v4851_v52 }
 0x1c3   : > { %2615 = vmatpush1.bf16.msra.mxu0 %v4089_v15  ;;  %2697 = vmatpush1.bf16.msra.mxu1 %v4092_v16 }
 0x1c4   : > { %2616 = vmatprep.subr.bf16.mxu0 %v4097_v17  ;;  %2698 = vmatprep.subr.bf16.mxu1 %v4100_v18 }
 0x1c7   : > { %2617 = vmatpush1.bf16.msra.mxu0 %v4095_v19  ;;  %2699 = vmatpush1.bf16.msra.mxu1 %v4098_v20 }
 0x1c8   : > { %2618 = vmatprep.subr.bf16.mxu0 %v4103_v21  ;;  %2700 = vmatprep.subr.bf16.mxu1 %v4106_v22 }
 0x1cb   : > { %2619 = vmatpush1.bf16.msra.mxu0 %v4101_v23  ;;  %2701 = vmatpush1.bf16.msra.mxu1 %v4104_v24 }
 0x1cc   : > { %2620 = vmatprep.subr.bf16.mxu0 %v4109_v25  ;;  %2702 = vmatprep.subr.bf16.mxu1 %v4112_v26 }
 0x1cf   : > { %2621 = vmatpush1.bf16.msra.mxu0 %v4107_v27  ;;  %2703 = vmatpush1.bf16.msra.mxu1 %v4110_v28 }
 0x1d0   : > { %2622 = vmatprep.subr.bf16.mxu0 %v4115_v29  ;;  %2704 = vmatprep.subr.bf16.mxu1 %v4118_v30  ;;  %v4173_v30 = vld [vmem:[%s4698_s5 + $0x200] ss:$16 sps:$4 sm:$0xff]  }
 0x1d3   : > { %2623 = vmatpush1.bf16.msra.mxu0 %v4113_v31  ;;  %2705 = vmatpush1.bf16.msra.mxu1 %v4116_v32  ;;  %v4176_v31 = vld [vmem:[%s4698_s5 + $0x208] ss:$16 sps:$4 sm:$0xff]  }
 0x1d4   : > { %2624 = vmatprep.subr.bf16.mxu0 %v4121_v33  ;;  %2706 = vmatprep.subr.bf16.mxu1 %v4124_v34  ;;  %v4181_v33 = vld [vmem:[%s4698_s5 + $0x224] ss:$16 sps:$4 sm:$0xff]   ;;  %v4184_v34 = vld [vmem:[%s4698_s5 + $0x22c] ss:$16 sps:$4 sm:$0xff]  }
 0x1d7   : > { %2625 = vmatpush1.bf16.msra.mxu0 %v4119_v35  ;;  %2707 = vmatpush1.bf16.msra.mxu1 %v4122_v36  ;;  %v4179_v36 = vld [vmem:[%s4698_s5 + $0x220] ss:$16 sps:$4 sm:$0xff]  }
 0x1d8   : > { %2626 = vmatprep.subr.bf16.mxu0 %v4127_v37  ;;  %2708 = vmatprep.subr.bf16.mxu1 %v4130_v42  ;;  %v4182_v37 = vld [vmem:[%s4698_s5 + $0x228] ss:$16 sps:$4 sm:$0xff]   ;;  %v4187_v42 = vld [vmem:[%s4698_s5 + $0x244] ss:$16 sps:$4 sm:$0xff]  }
 0x1db   : > { %2627 = vmatpush1.bf16.msra.mxu0 %v4125_v43  ;;  %2709 = vmatpush1.bf16.msra.mxu1 %v4128_v44  ;;  %v4190_v43 = vld [vmem:[%s4698_s5 + $0x24c] ss:$16 sps:$4 sm:$0xff]   ;;  %v4185_v44 = vld [vmem:[%s4698_s5 + $0x240] ss:$16 sps:$4 sm:$0xff]  }
 0x1dc   : > { %2628 = vmatprep.subr.bf16.mxu0 %v4133_v45  ;;  %2710 = vmatprep.subr.bf16.mxu1 %v4136_v46  ;;  %v4188_v45 = vld [vmem:[%s4698_s5 + $0x248] ss:$16 sps:$4 sm:$0xff]   ;;  %v4193_v46 = vld [vmem:[%s4698_s5 + $0x264] ss:$16 sps:$4 sm:$0xff]  }
 0x1df   : > { %2629 = vmatpush1.bf16.msra.mxu0 %v4131_v47  ;;  %2711 = vmatpush1.bf16.msra.mxu1 %v4134_v48  ;;  %v4196_v47 = vld [vmem:[%s4698_s5 + $0x26c] ss:$16 sps:$4 sm:$0xff]   ;;  %v4191_v48 = vld [vmem:[%s4698_s5 + $0x260] ss:$16 sps:$4 sm:$0xff]  }
 0x1e0   : > { %2630 = vmatprep.subr.bf16.mxu0 %v4139_v49  ;;  %2712 = vmatprep.subr.bf16.mxu1 %v4142_v50  ;;  %v4194_v49 = vld [vmem:[%s4698_s5 + $0x268] ss:$16 sps:$4 sm:$0xff]   ;;  %v4199_v50 = vld [vmem:[%s4698_s5 + $0x284] ss:$16 sps:$4 sm:$0xff]  }
 0x1e3   : > { %2631 = vmatpush1.bf16.msra.mxu0 %v4137_v51  ;;  %2713 = vmatpush1.bf16.msra.mxu1 %v4140_v53  ;;  %v4202_v51 = vld [vmem:[%s4698_s5 + $0x28c] ss:$16 sps:$4 sm:$0xff]   ;;  %v4197_v53 = vld [vmem:[%s4698_s5 + $0x280] ss:$16 sps:$4 sm:$0xff]  }
 0x1e4   : > { %2632 = vmatprep.subr.bf16.mxu0 %v4145_v55  ;;  %2714 = vmatprep.subr.bf16.mxu1 %v4148_v56  ;;  %v4200_v55 = vld [vmem:[%s4698_s5 + $0x288] ss:$16 sps:$4 sm:$0xff]   ;;  %v4205_v56 = vld [vmem:[%s4698_s5 + $0x2a4] ss:$16 sps:$4 sm:$0xff]  }
 0x1e7   : > { %2633 = vmatpush1.bf16.msra.mxu0 %v4143_v57  ;;  %2715 = vmatpush1.bf16.msra.mxu1 %v4146_v58  ;;  %v4208_v57 = vld [vmem:[%s4698_s5 + $0x2ac] ss:$16 sps:$4 sm:$0xff]   ;;  %v4203_v58 = vld [vmem:[%s4698_s5 + $0x2a0] ss:$16 sps:$4 sm:$0xff]  }
 0x1e8   : > { %2634 = vmatprep.subr.bf16.mxu0 %v4151_v59  ;;  %2716 = vmatprep.subr.bf16.mxu1 %v4154_v60  ;;  %v4206_v59 = vld [vmem:[%s4698_s5 + $0x2a8] ss:$16 sps:$4 sm:$0xff]   ;;  %v4211_v60 = vld [vmem:[%s4698_s5 + $0x2c4] ss:$16 sps:$4 sm:$0xff]  }
 0x1eb   : > { %2635 = vmatpush1.bf16.msra.mxu0 %v4149_v61  ;;  %2717 = vmatpush1.bf16.msra.mxu1 %v4152_v38  ;;  %v4214_v61 = vld [vmem:[%s4698_s5 + $0x2cc] ss:$16 sps:$4 sm:$0xff]   ;;  %v4209_v38 = vld [vmem:[%s4698_s5 + $0x2c0] ss:$16 sps:$4 sm:$0xff]  }
 0x1ec   : > { %2636 = vmatprep.subr.bf16.mxu0 %v4157_v62  ;;  %2718 = vmatprep.subr.bf16.mxu1 %v4160_v63  ;;  %v4212_v62 = vld [vmem:[%s4698_s5 + $0x2c8] ss:$16 sps:$4 sm:$0xff]   ;;  %v4217_v63 = vld [vmem:[%s4698_s5 + $0x2e4] ss:$16 sps:$4 sm:$0xff]  }
 0x1ef   : > { %2637 = vmatpush1.bf16.msra.mxu0 %v4155_v1  ;;  %2719 = vmatpush1.bf16.msra.mxu1 %v4158_v40  ;;  %v4220_v1 = vld [vmem:[%s4698_s5 + $0x2ec] ss:$16 sps:$4 sm:$0xff]   ;;  %v4215_v40 = vld [vmem:[%s4698_s5 + $0x2e0] ss:$16 sps:$4 sm:$0xff]  }
 0x1f0   : > { %2638 = vmatprep.subr.bf16.mxu0 %v4163_v2  ;;  %2720 = vmatprep.subr.bf16.mxu1 %v4166_v3  ;;  %v4218_v2 = vld [vmem:[%s4698_s5 + $0x2e8] ss:$16 sps:$4 sm:$0xff]   ;;  %v4223_v3 = vld [vmem:[%s4698_s5 + $0x304] ss:$16 sps:$4 sm:$0xff]  }
 0x1f3   : > { %2639 = vmatpush1.bf16.msra.mxu0 %v4161_v4  ;;  %2721 = vmatpush1.bf16.msra.mxu1 %v4164_v5  ;;  %v4226_v4 = vld [vmem:[%s4698_s5 + $0x30c] ss:$16 sps:$4 sm:$0xff]   ;;  %v4221_v5 = vld [vmem:[%s4698_s5 + $0x300] ss:$16 sps:$4 sm:$0xff]  }
 0x1f4   : > { %2640 = vmatprep.subr.bf16.mxu0 %v4169_v6  ;;  %2722 = vmatprep.subr.bf16.mxu1 %v4172_v0  ;;  %v4224_v6 = vld [vmem:[%s4698_s5 + $0x308] ss:$16 sps:$4 sm:$0xff]   ;;  %v4229_v0 = vld [vmem:[%s4698_s5 + $0x324] ss:$16 sps:$4 sm:$0xff]  }
 0x1f7   : > { %2641 = vmatpush1.bf16.msra.mxu0 %v4167_v7  ;;  %2723 = vmatpush1.bf16.msra.mxu1 %v4170_v8  ;;  %v4232_v7 = vld [vmem:[%s4698_s5 + $0x32c] ss:$16 sps:$4 sm:$0xff]   ;;  %v4227_v8 = vld [vmem:[%s4698_s5 + $0x320] ss:$16 sps:$4 sm:$0xff]  }
 0x1f8   : > { %2651 = vmatprep.subr.bf16.mxu0 %v4175_v9  ;;  %2733 = vmatprep.subr.bf16.mxu1 %v4178_v10  ;;  %v4230_v9 = vld [vmem:[%s4698_s5 + $0x328] ss:$16 sps:$4 sm:$0xff]   ;;  %v4235_v10 = vld [vmem:[%s4698_s5 + $0x344] ss:$16 sps:$4 sm:$0xff]  }
 0x28d   : > { %v1723_v15 = vpop.f32.mrb[4].mxu0  ;;  %v5004_v16 = vpop.f32.mrb[4].mxu1 }
 0x28e   : > { %v3745_v17 = vadd.f32 %v1723_v15, %v991_v12  ;;  %v1725_v18 = vpop.f32.mrb[5].mxu0  ;;  %v1807_v19 = vpop.f32.mrb[5].mxu1  ;;  %v4238_v12 = vld [vmem:[%s4698_s5 + $0x34c] ss:$16 sps:$4 sm:$0xff]   ;;  %v4241_v15 = vld [vmem:[%s4698_s5 + $0x364] ss:$16 sps:$4 sm:$0xff]  }
 0x28f   : > { %v3746_v20 = vadd.f32 %v1725_v18, %v995_v13  ;;  %v3748_v21 = vadd.f32 %v1807_v19, %v1003_v14  ;;  %v1727_v22 = vpop.f32.mrb[6].mxu0  ;;  %v1809_v23 = vpop.f32.mrb[6].mxu1  ;;  %v4233_v13 = vld [vmem:[%s4698_s5 + $0x340] ss:$16 sps:$4 sm:$0xff]   ;;  %v4236_v14 = vld [vmem:[%s4698_s5 + $0x348] ss:$16 sps:$4 sm:$0xff]  }
 0x290   : > { %v1812_v24 = vmax.f32 %v3745_v17, 0.0  ;;  %v1728_v25 = vpop.f32.mrb[7].mxu0  ;;  %v1810_v26 = vpop.f32.mrb[7].mxu1  ;;  %v4244_v17 = vld [vmem:[%s4698_s5 + $0x36c] ss:$16 sps:$4 sm:$0xff]  }
 0x291   : > { %v1813_v27 = vmax.f32 %v3746_v20, 0.0  ;;  %v1815_v28 = vmax.f32 %v3748_v21, 0.0  ;;  %v4239_v18 = vld [vmem:[%s4698_s5 + $0x360] ss:$16 sps:$4 sm:$0xff]   ;;  %v4242_v19 = vld [vmem:[%s4698_s5 + $0x368] ss:$16 sps:$4 sm:$0xff]  }
 0x292   : > { %v1816_v32 = vpack.c.bf16 %v1812_v24, %v1812_v24  ;;  %v4247_v20 = vld [vmem:[%s4698_s5 + $0x384] ss:$16 sps:$4 sm:$0xff]   ;;  %v4250_v21 = vld [vmem:[%s4698_s5 + $0x38c] ss:$16 sps:$4 sm:$0xff]   ;;  %v4245_v22 = vld [vmem:[%s4698_s5 + $0x380] ss:$16 sps:$4 sm:$0xff]  }
 0x293   : > { %v1817_v29 = vpack.c.bf16 %v1813_v27, %v1813_v27  ;;  %v1819_v35 = vpack.c.bf16 %v1815_v28, %v1815_v28  ;;  %v4248_v23 = vld [vmem:[%s4698_s5 + $0x388] ss:$16 sps:$4 sm:$0xff]   ;;  %v4253_v24 = vld [vmem:[%s4698_s5 + $0x3a4] ss:$16 sps:$4 sm:$0xff]   ;;  %v4256_v25 = vld [vmem:[%s4698_s5 + $0x3ac] ss:$16 sps:$4 sm:$0xff]   ;;  %v999_v28 = vrot.slane %v4996_v11, %v4908_v54 }
 0x294   : > { %v4251_v26 = vld [vmem:[%s4698_s5 + $0x3a0] ss:$16 sps:$4 sm:$0xff]   ;;  %v4254_v27 = vld [vmem:[%s4698_s5 + $0x3a8] ss:$16 sps:$4 sm:$0xff]   ;;  %v4268_v11 = vld [vmem:[%s4698_s5 + $0x3ec] ss:$16 sps:$4 sm:$0xff]  }
 0x295   : > { %2642 = vmatprep.mubr.bf16.mxu0 %v1817_v29  ;;  %2724 = vmatprep.mubr.bf16.mxu1 %v1817_v29  ;;  %v4259_v29 = vld [vmem:[%s4698_s5 + $0x3c4] ss:$16 sps:$4 sm:$0xff]  }
 0x296   : > { %2643 = vmatmul.mubr.bf16.vlgmr.msra.gmra.mrb[8].mxu0 %v1816_v32  ;;  %2725 = vmatmul.mubr.bf16.vlgmr.msra.gmra.mrb[8].mxu1 %v1816_v32  ;;  %v4260_v32 = vld [vmem:[%s4698_s5 + $0x3c8] ss:$16 sps:$4 sm:$0xff]  }
 0x297   : > { %2652 = vmatpush1.bf16.msra.mxu0 %v4173_v30  ;;  %2734 = vmatpush1.bf16.msra.mxu1 %v4176_v31  ;;  %v4262_v30 = vld [vmem:[%s4698_s5 + $0x3cc] ss:$16 sps:$4 sm:$0xff]   ;;  %v4257_v31 = vld [vmem:[%s4698_s5 + $0x3c0] ss:$16 sps:$4 sm:$0xff]  }
 0x298   : > { %2683 = vmatprep.mubr.bf16.mxu0 %v1819_v35  ;;  %2765 = vmatprep.mubr.bf16.mxu1 %v1819_v35  ;;  %v4263_v35 = vld [vmem:[%s4698_s5 + $0x3e0] ss:$16 sps:$4 sm:$0xff]  }
 0x299   : > { %2653 = vmatprep.subr.bf16.mxu0 %v4181_v33  ;;  %2735 = vmatprep.subr.bf16.mxu1 %v4184_v34  ;;  %v3747_v33 = vadd.f32 %v5004_v16, %v999_v28  ;;  %v4265_v34 = vld [vmem:[%s4698_s5 + $0x3e4] ss:$16 sps:$4 sm:$0xff]  }
 0x29a   : > { %v4271_v16 = vld [vmem:[%s4828_s24] sm:$0xff]  }
 0x29b   : > { %2654 = vmatpush1.bf16.msra.mxu0 %v4179_v36  ;;  %2736 = vmatpush1.bf16.msra.mxu1 %v4182_v37  ;;  %v4266_v36 = vld [vmem:[%s4698_s5 + $0x3e8] ss:$16 sps:$4 sm:$0xff]   ;;  %v1814_v37 = vmax.f32 %v3747_v33, 0.0  ;;  %s3363_s5 = sshll.u32 %s4686_s3, 2 }
 0x29c   : > { %2655 = vmatprep.subr.bf16.mxu0 %v4187_v42  ;;  %2737 = vmatprep.subr.bf16.mxu1 %v4190_v43  ;;  %v4269_v42 = vld [vmem:[%s4828_s24 + $0x40] sm:$0xff]   ;;  %s447_s26 = scalar_lea.vmem [#allocation6], %s3363_s5 }
 0x29d   : > { %v4270_v43 = vld [vmem:[%s4828_s24 + $0xc0] sm:$0xff]  }
 0x29f   : > { %2656 = vmatpush1.bf16.msra.mxu0 %v4185_v44  ;;  %2738 = vmatpush1.bf16.msra.mxu1 %v4188_v45  ;;  %v4272_v44 = vld [vmem:[%s4828_s24 + $0x80] sm:$0xff]   ;;  %v1818_v45 = vpack.c.bf16 %v1814_v37, %v1814_v37 }
 0x2a0   : > { %2657 = vmatprep.subr.bf16.mxu0 %v4193_v46  ;;  %2739 = vmatprep.subr.bf16.mxu1 %v4196_v47  ;;  %v4273_v46 = vld [vmem:[%s4828_s24 + $0x48] sm:$0xff]  }
 0x2a1   : > { %v4274_v47 = vld [vmem:[%s4828_s24 + $0xc8] sm:$0xff]  }
 0x2a3   : > { %2658 = vmatpush1.bf16.msra.mxu0 %v4191_v48  ;;  %2740 = vmatpush1.bf16.msra.mxu1 %v4194_v49  ;;  %v4275_v48 = vld [vmem:[%s4828_s24 + $0x8] sm:$0xff]  }
 0x2a4   : > { %2659 = vmatprep.subr.bf16.mxu0 %v4199_v50  ;;  %2741 = vmatprep.subr.bf16.mxu1 %v4202_v51  ;;  %v4276_v49 = vld [vmem:[%s4828_s24 + $0x88] sm:$0xff]   ;;  %v4277_v50 = vld [vmem:[%s4828_s24 + $0x50] sm:$0xff]  }
 0x2a5   : > { %v4278_v51 = vld [vmem:[%s4828_s24 + $0xd0] sm:$0xff]  }
 0x2a7   : > { %2660 = vmatpush1.bf16.msra.mxu0 %v4197_v53  ;;  %2742 = vmatpush1.bf16.msra.mxu1 %v4200_v55  ;;  %v4279_v53 = vld [vmem:[%s4828_s24 + $0x10] sm:$0xff]  }
 0x2a8   : > { %2661 = vmatprep.subr.bf16.mxu0 %v4205_v56  ;;  %2743 = vmatprep.subr.bf16.mxu1 %v4208_v57  ;;  %v4280_v55 = vld [vmem:[%s4828_s24 + $0x90] sm:$0xff]   ;;  %v4281_v56 = vld [vmem:[%s4828_s24 + $0x58] sm:$0xff]  }
 0x2a9   : > { %v4282_v57 = vld [vmem:[%s4828_s24 + $0xd8] sm:$0xff]  }
 0x2ab   : > { %2662 = vmatpush1.bf16.msra.mxu0 %v4203_v58  ;;  %2744 = vmatpush1.bf16.msra.mxu1 %v4206_v59  ;;  %v4283_v58 = vld [vmem:[%s4828_s24 + $0x18] sm:$0xff]  }
 0x2ac   : > { %2663 = vmatprep.subr.bf16.mxu0 %v4211_v60  ;;  %2745 = vmatprep.subr.bf16.mxu1 %v4214_v61  ;;  %v4284_v59 = vld [vmem:[%s4828_s24 + $0x98] sm:$0xff]   ;;  %v4285_v60 = vld [vmem:[%s4828_s24 + $0x60] sm:$0xff]  }
 0x2ad   : > { %v4286_v61 = vld [vmem:[%s4828_s24 + $0xe0] sm:$0xff]  }
 0x2af   : > { %2664 = vmatpush1.bf16.msra.mxu0 %v4209_v38  ;;  %2746 = vmatpush1.bf16.msra.mxu1 %v4212_v62  ;;  %v4287_v38 = vld [vmem:[%s4828_s24 + $0x20] sm:$0xff]  }
 0x2b0   : > { %2665 = vmatprep.subr.bf16.mxu0 %v4217_v63  ;;  %2747 = vmatprep.subr.bf16.mxu1 %v4220_v1  ;;  %v4288_v62 = vld [vmem:[%s4828_s24 + $0xa0] sm:$0xff]   ;;  %v4289_v63 = vld [vmem:[%s4828_s24 + $0x68] sm:$0xff]  }
 0x2b1   : > { %v4290_v1 = vld [vmem:[%s4828_s24 + $0xe8] sm:$0xff]  }
 0x2b3   : > { %2666 = vmatpush1.bf16.msra.mxu0 %v4215_v40  ;;  %2748 = vmatpush1.bf16.msra.mxu1 %v4218_v2  ;;  %v4291_v40 = vld [vmem:[%s4828_s24 + $0x28] sm:$0xff]  }
 0x2b4   : > { %2667 = vmatprep.subr.bf16.mxu0 %v4223_v3  ;;  %2749 = vmatprep.subr.bf16.mxu1 %v4226_v4  ;;  %v4292_v2 = vld [vmem:[%s4828_s24 + $0xa8] sm:$0xff]   ;;  %v4293_v3 = vld [vmem:[%s4828_s24 + $0x70] sm:$0xff]  }
 0x2b5   : > { %v4294_v4 = vld [vmem:[%s4828_s24 + $0xf0] sm:$0xff]  }
 0x2b7   : > { %2668 = vmatpush1.bf16.msra.mxu0 %v4221_v5  ;;  %2750 = vmatpush1.bf16.msra.mxu1 %v4224_v6  ;;  %v4295_v5 = vld [vmem:[%s4828_s24 + $0x30] sm:$0xff]  }
 0x2b8   : > { %2669 = vmatprep.subr.bf16.mxu0 %v4229_v0  ;;  %2751 = vmatprep.subr.bf16.mxu1 %v4232_v7  ;;  %v4296_v6 = vld [vmem:[%s4828_s24 + $0xb0] sm:$0xff]   ;;  %v4297_v0 = vld [vmem:[%s4828_s24 + $0x78] sm:$0xff]  }
 0x2b9   : > { %v4298_v7 = vld [vmem:[%s4828_s24 + $0xf8] sm:$0xff]  }
 0x2bb   : > { %2670 = vmatpush1.bf16.msra.mxu0 %v4227_v8  ;;  %2752 = vmatpush1.bf16.msra.mxu1 %v4230_v9  ;;  %v4299_v8 = vld [vmem:[%s4828_s24 + $0x38] sm:$0xff]  }
 0x2bc   : > { %2671 = vmatprep.subr.bf16.mxu0 %v4235_v10  ;;  %2753 = vmatprep.subr.bf16.mxu1 %v4238_v12  ;;  %v4300_v9 = vld [vmem:[%s4828_s24 + $0xb8] sm:$0xff]   ;;  %v1948_v10 = vld [vmem:[%s447_s26] sm:$0xf] }
 0x2bd   : > { %v1953_v12 = vrot.slane %v1948_v10, %v4839_v39 }
 0x2bf   : > { %2672 = vmatpush1.bf16.msra.mxu0 %v4233_v13  ;;  %2754 = vmatpush1.bf16.msra.mxu1 %v4236_v14  ;;  %v1961_v13 = vrot.slane %v1948_v10, %v4908_v54  ;;  %v1957_v14 = vrot.slane %v1948_v10, %v4844_v41 }
 0x2c0   : > { %2673 = vmatprep.subr.bf16.mxu0 %v4241_v15  ;;  %2755 = vmatprep.subr.bf16.mxu1 %v4244_v17  ;;  %v1965_v15 = vrot.slane %v1948_v10, %v4851_v52 }
 0x2c3   : > { %2674 = vmatpush1.bf16.msra.mxu0 %v4239_v18  ;;  %2756 = vmatpush1.bf16.msra.mxu1 %v4242_v19 }
 0x2c4   : > { %2675 = vmatprep.subr.bf16.mxu0 %v4247_v20  ;;  %2757 = vmatprep.subr.bf16.mxu1 %v4250_v21 }
 0x2c7   : > { %2676 = vmatpush1.bf16.msra.mxu0 %v4245_v22  ;;  %2758 = vmatpush1.bf16.msra.mxu1 %v4248_v23 }
 0x2c8   : > { %2677 = vmatprep.subr.bf16.mxu0 %v4253_v24  ;;  %2759 = vmatprep.subr.bf16.mxu1 %v4256_v25 }
 0x2cb   : > { %2678 = vmatpush1.bf16.msra.mxu0 %v4251_v26  ;;  %2760 = vmatpush1.bf16.msra.mxu1 %v4254_v27 }
 0x2cc   : > { %2679 = vmatprep.subr.bf16.mxu0 %v4259_v29  ;;  %2761 = vmatprep.subr.bf16.mxu1 %v4262_v30 }
 0x2cf   : > { %2680 = vmatpush1.bf16.msra.mxu0 %v4257_v31  ;;  %2762 = vmatpush1.bf16.msra.mxu1 %v4260_v32 }
 0x2d0   : > { %2681 = vmatprep.subr.bf16.mxu0 %v4265_v34  ;;  %2763 = vmatprep.subr.bf16.mxu1 %v4268_v11  ;;  %v3659_v11 = vld [vmem:[%s543_s21] ss:$0 sm:$0xff] }
 0x2d3   : > { %2682 = vmatpush1.bf16.msra.mxu0 %v4263_v35  ;;  %2764 = vmatpush1.bf16.msra.mxu1 %v4266_v36 }
 0x2d4   : > { %3701 = vmatprep.subr.bf16.mxu0 %v4269_v42  ;;  %3723 = vmatprep.subr.bf16.mxu1 %v4270_v43 }
 0x2d6   : > { %2684 = vmatmul.mubr.bf16.vlgmr.msra.gmra.mrb[8].mxu0 %v1818_v45  ;;  %2766 = vmatmul.mubr.bf16.vlgmr.msra.gmra.mrb[8].mxu1 %v1818_v45 }
 0x2d7   : > { %3702 = vmatpush3.bf16.msra.mxu0 %v4271_v16  ;;  %3724 = vmatpush3.bf16.msra.mxu1 %v4272_v44 }
 0x2d8   : > { %3703 = vmatprep.subr.bf16.mxu0 %v4273_v46  ;;  %3725 = vmatprep.subr.bf16.mxu1 %v4274_v47 }
 0x2db   : > { %3704 = vmatpush3.bf16.msra.mxu0 %v4275_v48  ;;  %3726 = vmatpush3.bf16.msra.mxu1 %v4276_v49 }
 0x2dc   : > { %3705 = vmatprep.subr.bf16.mxu0 %v4277_v50  ;;  %3727 = vmatprep.subr.bf16.mxu1 %v4278_v51 }
 0x2df   : > { %3706 = vmatpush3.bf16.msra.mxu0 %v4279_v53  ;;  %3728 = vmatpush3.bf16.msra.mxu1 %v4280_v55 }
 0x2e0   : > { %3707 = vmatprep.subr.bf16.mxu0 %v4281_v56  ;;  %3729 = vmatprep.subr.bf16.mxu1 %v4282_v57 }
 0x2e3   : > { %3708 = vmatpush3.bf16.msra.mxu0 %v4283_v58  ;;  %3730 = vmatpush3.bf16.msra.mxu1 %v4284_v59 }
 0x2e4   : > { %3709 = vmatprep.subr.bf16.mxu0 %v4285_v60  ;;  %3731 = vmatprep.subr.bf16.mxu1 %v4286_v61 }
 0x2e7   : > { %3710 = vmatpush3.bf16.msra.mxu0 %v4287_v38  ;;  %3732 = vmatpush3.bf16.msra.mxu1 %v4288_v62 }
 0x2e8   : > { %3711 = vmatprep.subr.bf16.mxu0 %v4289_v63  ;;  %3733 = vmatprep.subr.bf16.mxu1 %v4290_v1 }
 0x2eb   : > { %3712 = vmatpush3.bf16.msra.mxu0 %v4291_v40  ;;  %3734 = vmatpush3.bf16.msra.mxu1 %v4292_v2 }
 0x2ec   : > { %3713 = vmatprep.subr.bf16.mxu0 %v4293_v3  ;;  %3735 = vmatprep.subr.bf16.mxu1 %v4294_v4 }
 0x2ef   : > { %3714 = vmatpush3.bf16.msra.mxu0 %v4295_v5  ;;  %3736 = vmatpush3.bf16.msra.mxu1 %v4296_v6 }
 0x2f0   : > { %3715 = vmatprep.subr.bf16.mxu0 %v4297_v0  ;;  %3737 = vmatprep.subr.bf16.mxu1 %v4298_v7 }
 0x2f3   : > { %3716 = vmatpush3.bf16.msra.mxu0 %v4299_v8  ;;  %3738 = vmatpush3.bf16.msra.mxu1 %v4300_v9 }
 0x3a9   : > { %v2685_v17 = vpop.f32.mrb[8].mxu0  ;;  %v2767_v18 = vpop.f32.mrb[8].mxu1 }
 0x3aa   : > { %v3749_v19 = vadd.f32 %v2685_v17, %v1953_v12  ;;  %v3751_v20 = vadd.f32 %v2767_v18, %v1961_v13  ;;  %v2687_v21 = vpop.f32.mrb[9].mxu0  ;;  %v2769_v22 = vpop.f32.mrb[9].mxu1 }
 0x3ab   : > { %v3750_v23 = vadd.f32 %v2687_v21, %v1957_v14  ;;  %v3752_v24 = vadd.f32 %v2769_v22, %v1965_v15  ;;  %v2689_v25 = vpop.f32.mrb[10].mxu0  ;;  %v2771_v26 = vpop.f32.mrb[10].mxu1 }
 0x3ac   : > { %v2774_v27 = vmax.f32 %v3749_v19, 0.0  ;;  %v2776_v28 = vmax.f32 %v3751_v20, 0.0  ;;  %v2690_v39 = vpop.f32.mrb[11].mxu0  ;;  %v2772_v29 = vpop.f32.mrb[11].mxu1 }
 0x3ad   : > { %v2775_v54 = vmax.f32 %v3750_v23, 0.0  ;;  %v2777_v30 = vmax.f32 %v3752_v24, 0.0 }
 0x3ae   : > { %v2778_v52 = vpack.c.bf16 %v2774_v27, %v2774_v27  ;;  %v2780_v32 = vpack.c.bf16 %v2776_v28, %v2776_v28 }
 0x3af   : > { %v2779_v41 = vpack.c.bf16 %v2775_v54, %v2775_v54  ;;  %v2781_v31 = vpack.c.bf16 %v2777_v30, %v2777_v30 }
 0x3b1   : > { %3077 = vmatprep.mubr.bf16.mxu0 %v2779_v41  ;;  %3117 = vmatprep.mubr.bf16.mxu1 %v2781_v31 }
 0x3b2   : > { %3078 = vmatmul.mubr.bf16.vlgmr.msra.gmra.mrb[12].mxu0 %v2778_v52  ;;  %3118 = vmatmul.mubr.bf16.vlgmr.msra.gmra.mrb[12].mxu1 %v2780_v32 }
 0x485   : > { %v3717_v33 = vpop.f32.mrb[12].mxu0  ;;  %v3739_v34 = vpop.f32.mrb[12].mxu1  ;;  %3128 = sbr.rel (%p3692_p2) target bundleno = 1480 (0x5c8), region = 72 }
 0x486   : > { %v3718_v35 = vpop.f32.mrb[13].mxu0  ;;  %v3740_v36 = vpop.f32.mrb[13].mxu1 }
 0x487   : > { %v3719_v37 = vadd.f32 %v3718_v35, %v3717_v33  ;;  %v3741_v42 = vadd.f32 %v3740_v36, %v3739_v34  ;;  %v3720_v43 = vpop.f32.mrb[14].mxu0  ;;  %v3742_v16 = vpop.f32.mrb[14].mxu1 }
 0x488   : > { %v3721_v44 = vpop.f32.mrb[15].mxu0  ;;  %v3743_v45 = vpop.f32.mrb[15].mxu1 }
 0x489   : > { %v3080_v46 = vadd.f32 %v3719_v37, %v3659_v11 }
 0x48b   : > { %v3120_v47 = vadd.f32 %v3741_v42, %v3080_v46 }
 0x48d   : > { %v3130_v48 = vsel %vm3129_vm0, %v3120_v47, -inf }
 0x48e   : > { %3131 = vmax.xlane.f32.xlu0 %v3130_v48 }
 0x51b   : > { %v3132_v49 = vpop.xlane.xlu0 %3131 }
 0x51c   : > { %v3133_v50 = vsub.f32 %v3120_v47, %v3132_v49 }
 0x51e   : > { %v3134_v51 = vmul.f32 1.442695, %v3133_v50 }
 0x520   : > { %4301 = vpow2.f32 %v3134_v51 }
 0x52a   : > { %v4302_v53 = vpop.eup %4301 }
 0x52b   : > { %v3136_v55 = vsel %vm3129_vm0, %v4302_v53, 0.0 }
 0x52c   : > { %3137 = vadd.xlane.f32.xlu0 %v3136_v55 }
 0x5b9   : > { %v3138_v56 = vpop.xlane.xlu0 %3137 }
 0x5ba   : > { %4303 = vrcp.f32 %v3138_v56 }
 0x5c4   : > { %v4304_v57 = vpop.eup %4303 }
 0x5c5   : > { %v3140_v58 = vmul.f32 %v4304_v57, %v4302_v53 }
 0x5c7   : > { %3141 = vst.msk [vmem:[%s4720_s28] sm:$0xff] %vm3129_vm0, %v3140_v58 }
 0x5c8 PF: > { %p3693_p7 = scmp.ne.s32.totalorder %s4441_s12, 1 }
 0x5c9   : > { %vm3146_vm1 = vcmask (!%p3693_p7), 31744  }
 0x5ca   : > { %3145 = sbr.rel (%p3693_p7) target bundleno = 1489 (0x5d1), region = 76  ;;  %3147 = vst.msk [vmem:[%s4720_s28] sm:$0xff] (!%p3693_p7), %vm3146_vm1, %v3120_v47 }
 0x5d1 PF: > { %s25_s14 = sadd.s32 1, %s4449_s14   ;;  %s5173_s11 = sld [smem:[#allocation9_spill]] }
 0x5d2   : > { %p22_p10 = scmp.ge.s32.totalorder %s25_s14, 4   ;;  %s5174_s25 = sld [smem:[#allocation11_spill]] }
 0x5d3   : > { %s5175_s27 = sld [smem:[#allocation10_spill]]  ;;  %s5176_s30 = smov %s4433_s10 }
 0x5d4   : > { %s5179_s12 = smov %s4445_s13  ;;  %24 = sbr.rel (!%p22_p10) target bundleno = 9 (0x9), region = 146 }
 0x5d7   : > { %s5177_s10 = smov %s5173_s11 }
 0x5d8   : > { %s5178_s11 = smov %s5174_s25 }
 0x5d9   : > { %s5180_s13 = smov %s5175_s27 }
 0x5db   :  { %3173 = vsyncpa [#allocation3], 1 }
 0x5dc   :  { %3175 = vsyncpa [#allocation3 + $0x1], 1 }
 0x5dd   :  { %3176 = vsyncpa [#allocation5], 1 }
 0x5de   :  { %3178 = vsyncpa [#allocation5 + $0x1], 1 }

</bundles_post_ra>
